<compile_context>
chip_gen: v7x
topology: tpu7x:2x2x1
jax: 0.10.0
libtpu: 0.0.40
codegen_flags: <defaults>
</compile_context>

<pallas_src>
import numpy as np
import jax
import jax.numpy as jnp
from jax import lax
from jax.experimental import pallas as pl
from jax.experimental.pallas import tpu as pltpu

EMB = 768   # input embedding dim (nn.Linear(768, 128))
HID = 128   # hidden dim of linear + LSTM


def _make_kernel(batch_block, seq_chunk, unroll):
    Bb, Tc = batch_block, seq_chunk

    def kernel(x_ref, w1_ref, b1_ref, wih_ref, whh_ref, bg_ref,
               wout_ref, bout_ref, out_ref, h_ref, c_ref, m_ref, xw_ref):
        """One grid step = one (batch_block, seq_chunk) tile of the input.

        x_ref   : (Bb, Tc, EMB)     activations (original batch-first layout)
        w1_ref  : (EMB, HID)        bf16  W1^T
        b1_ref  : (1, HID)          f32
        wih_ref : (HID, 4*HID)      bf16  W_ih^T (gate order i,f,g,o; i/f/o cols pre-scaled 0.5)
        whh_ref : (HID, 4*HID)      bf16  W_hh^T (same pre-scaling)
        bg_ref  : (1, 4*HID)        f32   b_ih + b_hh (same pre-scaling)
        wout_ref: (HID, E)          f32   W_out^T
        bout_ref: (1, E)            f32
        out_ref : (Bb, E)           softmax probabilities (written on last chunk)
        h/c/m_ref: (Bb, HID)        f32 carries across the sequence-chunk grid axis
        xw_ref  : (Bb*Tc, 4*HID)    f32 staged gate pre-activations (row = b*Tc + t)
        """
        t_idx = pl.program_id(1)

        # ---- init carries at the first chunk of this batch block -----------
        @pl.when(t_idx == 0)
        def _():
            h_ref[...] = jnp.zeros_like(h_ref)
            c_ref[...] = jnp.zeros_like(c_ref)
            m_ref[...] = jnp.full_like(m_ref, -jnp.inf)

        # ---- token-parallel projections: Linear(768->128)+ReLU and the
        #      x->gate projection (bf16 MXU, f32 accumulation). The result is
        #      staged in VMEM scratch so no big value stays live in vregs. ----
        x = x_ref[...].astype(jnp.bfloat16).reshape(Bb * Tc, EMB)
        h_lin = jnp.maximum(
            jnp.dot(x, w1_ref[...], preferred_element_type=jnp.float32)
            + b1_ref[...], 0.0)                                   # (Bb*Tc, HID) f32
        xw_ref[...] = (jnp.dot(h_lin.astype(jnp.bfloat16), wih_ref[...],
                               preferred_element_type=jnp.float32)
                       + bg_ref[...])                             # (Bb*Tc, 4H) f32

        # ---- LSTM recurrence over the chunk (latency-bound, serial) --------
        def read_gates(t):
            # Gate pre-activations for all Bb rows at time t: Bb canonical
            # dynamic-sublane reads from the 2-D scratch (row b*Tc + t).
            rows = [xw_ref[pl.ds(b * Tc + t, 1), :] for b in range(Bb)]
            return rows[0] if Bb == 1 else jnp.concatenate(rows, axis=0)

        def step(t, carry):
            h, c, m = carry
            gates = read_gates(t) + jnp.dot(
                h.astype(jnp.bfloat16), whh_ref[...],
                preferred_element_type=jnp.float32)               # (Bb, 4H) f32
            # i/f/o columns were pre-scaled by 0.5 on the host, so
            # sigmoid(x) == 0.5*tanh(x/2)+0.5 needs only this single tanh.
            tg = jnp.tanh(gates)
            i_g = 0.5 * tg[:, 0 * HID:1 * HID] + 0.5
            f_g = 0.5 * tg[:, 1 * HID:2 * HID] + 0.5
            g_g = tg[:, 2 * HID:3 * HID]
            o_g = 0.5 * tg[:, 3 * HID:4 * HID] + 0.5
            c = f_g * c + i_g * g_g
            h = o_g * jnp.tanh(c)
            m = jnp.maximum(m, h)                 # AdaptiveMaxPool1d(1) over time
            return h, c, m

        h, c, m = lax.fori_loop(0, Tc, step,
                                (h_ref[...], c_ref[...], m_ref[...]),
                                unroll=unroll)
        h_ref[...] = h
        c_ref[...] = c
        m_ref[...] = m

        # ---- finalize on last chunk: Linear(128->E) + exact softmax --------
        @pl.when(t_idx == pl.num_programs(1) - 1)
        def _():
            logits = jnp.dot(m, wout_ref[...],
                             preferred_element_type=jnp.float32) + bout_ref[...]
            z = logits - jnp.max(logits, axis=1, keepdims=True)
            e = jnp.exp(z)
            out_ref[...] = (e / jnp.sum(e, axis=1, keepdims=True)
                            ).astype(out_ref.dtype)

    return kernel


def _pick_seq_chunk(S):
    """Largest 8-aligned divisor of S that is <= 128; whole sequence otherwise."""
    if S <= 128:
        return S
    best = 0
    for d in range(8, 129, 8):
        if S % d == 0:
            best = d
    # Poor divisor structure (e.g. prime S): one chunk — fori_loop keeps code
    # size bounded and the xw scratch stays modest for realistic S.
    return best if best >= 32 else S


def _scale_ifo_cols(a):
    """Scale the i/f/o gate columns (last-axis layout [i,f,g,o]) by 0.5."""
    s = jnp.concatenate([jnp.full((2 * HID,), 0.5, a.dtype),
                         jnp.ones((HID,), a.dtype),
                         jnp.full((HID,), 0.5, a.dtype)])
    return a * s


def approach2_forward(x_bse, params, *, seq_chunk=None, batch_block=None):
    """x_bse: (B, S, 768) exactly as in the PyTorch module (batch_first).
    x may be f32 or bf16 (bf16 halves the dominant HBM stream; the kernel
    truncates to bf16 before the MXU either way).

    seq_chunk:   sequence tile length (pipelined 'arbitrary' grid axis).
    batch_block: batch tile ('parallel' grid axis).  Default = whole batch.
                 Only split on megacore parts (v7x) with >= ~64 rows per core;
                 on v5e/v6e (single TC) splitting is pure overhead.
    """
    w1t, b1, wiht, whht, bg, woutt, bout = params
    B, S, _ = x_bse.shape
    E = woutt.shape[1]

    if batch_block is None:
        batch_block = B
    assert B % batch_block == 0, "batch_block must divide B"

    if seq_chunk is None:
        seq_chunk = _pick_seq_chunk(S)
    assert S % seq_chunk == 0, "seq_chunk must divide S"
    assert seq_chunk == S or seq_chunk % 8 == 0, "seq_chunk must be 8-aligned or == S"

    unroll = next(u for u in (8, 4, 2, 1) if seq_chunk % u == 0)
    grid = (B // batch_block, S // seq_chunk)

    # One-time weight prep: bf16 for every MXU operand of the hot loops, and
    # the 0.5 pre-scaling of i/f/o columns for the sigmoid-as-tanh rewrite.
    w1_bf = w1t.astype(jnp.bfloat16)
    wih_bf = _scale_ifo_cols(wiht).astype(jnp.bfloat16)
    whh_bf = _scale_ifo_cols(whht).astype(jnp.bfloat16)
    bg_s = _scale_ifo_cols(bg)

    const = lambda b, t: (0, 0)
    in_specs = [
        # x is tiled over (batch_block, seq_chunk) -> double-buffered DMA.
        pl.BlockSpec((batch_block, seq_chunk, EMB), lambda b, t: (b, t, 0)),
        pl.BlockSpec((EMB, HID), const),          # W1^T      (bf16)
        pl.BlockSpec((1, HID), const),            # b1
        pl.BlockSpec((HID, 4 * HID), const),      # W_ih^T    (bf16, scaled)
        pl.BlockSpec((HID, 4 * HID), const),      # W_hh^T    (bf16, scaled)
        pl.BlockSpec((1, 4 * HID), const),        # b_ih+b_hh (scaled)
        pl.BlockSpec((HID, E), const),            # W_out^T
        pl.BlockSpec((1, E), const),              # b_out
    ]
    out_specs = pl.BlockSpec((batch_block, E), lambda b, t: (b, 0))

    x_bytes = x_bse.size * x_bse.dtype.itemsize
    w_bytes = (w1_bf.size + wih_bf.size + whh_bf.size) * 2 \
        + (b1.size + bg_s.size + woutt.size + bout.size) * 4
    cost = pl.CostEstimate(
        flops=2 * B * S * (EMB * HID + 2 * HID * 4 * HID) + 2 * B * HID * E,
        transcendentals=5 * B * S * HID,
        bytes_accessed=int(x_bytes + w_bytes + B * E * 4),
    )

    kernel = _make_kernel(batch_block, seq_chunk, unroll)

    return pl.pallas_call(
        kernel,
        out_shape=jax.ShapeDtypeStruct((B, E), jnp.float32),
        grid=grid,
        in_specs=in_specs,
        out_specs=out_specs,
        scratch_shapes=[
            pltpu.VMEM((batch_block, HID), jnp.float32),            # h carry
            pltpu.VMEM((batch_block, HID), jnp.float32),            # c carry
            pltpu.VMEM((batch_block, HID), jnp.float32),            # running max
            pltpu.VMEM((batch_block * seq_chunk, 4 * HID), jnp.float32),  # xw stage
        ],
        compiler_params=pltpu.CompilerParams(
            dimension_semantics=("parallel", "arbitrary"),
            vmem_limit_bytes=32 * 1024 * 1024),
        cost_estimate=cost,
    )(x_bse, w1_bf, b1, wih_bf, whh_bf, bg_s, woutt, bout)


def reference_forward(x_bse, params):
    """Pure-JAX f32 reference with PyTorch LSTM semantics (gate order i,f,g,o)."""
    w1t, b1, wiht, whht, bg, woutt, bout = params
    hp = lax.Precision.HIGHEST
    B, S, _ = x_bse.shape
    h_lin = jnp.maximum(jnp.dot(x_bse, w1t, precision=hp) + b1, 0.0)
    h = jnp.zeros((B, HID), jnp.float32)
    c = jnp.zeros((B, HID), jnp.float32)
    m = jnp.full((B, HID), -jnp.inf, jnp.float32)
    for t in range(S):
        gates = (jnp.dot(h_lin[:, t, :], wiht, precision=hp) + bg
                 + jnp.dot(h, whht, precision=hp))
        i = jax.nn.sigmoid(gates[:, :HID])
        f = jax.nn.sigmoid(gates[:, HID:2 * HID])
        g = jnp.tanh(gates[:, 2 * HID:3 * HID])
        o = jax.nn.sigmoid(gates[:, 3 * HID:])
        c = f * c + i * g
        h = o * jnp.tanh(c)
        m = jnp.maximum(m, h)
    logits = jnp.dot(m, woutt, precision=hp) + bout
    return jax.nn.softmax(logits, axis=1)


def init_params(key, num_entities):
    """Deterministic synthetic parameters (PyTorch layouts, then transposed)."""
    ks = jax.random.split(key, 8)
    scale = 0.05
    w1 = scale * jax.random.normal(ks[0], (HID, EMB), jnp.float32)     # (128,768)
    b1 = scale * jax.random.normal(ks[1], (HID,), jnp.float32)
    w_ih = scale * jax.random.normal(ks[2], (4 * HID, HID), jnp.float32)
    w_hh = scale * jax.random.normal(ks[3], (4 * HID, HID), jnp.float32)
    b_ih = scale * jax.random.normal(ks[4], (4 * HID,), jnp.float32)
    b_hh = scale * jax.random.normal(ks[5], (4 * HID,), jnp.float32)
    w_out = scale * jax.random.normal(ks[6], (num_entities, HID), jnp.float32)
    b_out = scale * jax.random.normal(ks[7], (num_entities,), jnp.float32)
    return (
        w1.T,                                 # (768, 128)
        b1.reshape(1, HID),                   # (1, 128)
        w_ih.T,                               # (128, 512)
        w_hh.T,                               # (128, 512)
        (b_ih + b_hh).reshape(1, 4 * HID),    # (1, 512)
        w_out.T,                              # (128, E)
        b_out.reshape(1, num_entities),       # (1, E)
    )


if __name__ == "__main__":
    B, E = 2, 8  # batch, num_entities

    key = jax.random.PRNGKey(0)
    kx1, kx2, kp = jax.random.split(key, 3)
    params = init_params(kp, E)

    # Test 1: S=8 (single chunk, matches the original toy test).
    x1 = jax.random.normal(kx1, (B, 8, EMB), jnp.float32)
    out1 = jax.block_until_ready(approach2_forward(x1, params))
    ref1 = reference_forward(x1, params)
    np.testing.assert_allclose(np.asarray(out1), np.asarray(ref1),
                               rtol=4e-3, atol=4e-3)

    # Test 2: S=32 in two pipelined chunks (exercises the carried h/c/m and
    # the xw scratch staging across grid steps).
    x2 = jax.random.normal(kx2, (B, 32, EMB), jnp.float32)
    out2 = jax.block_until_ready(approach2_forward(x2, params, seq_chunk=16))
    ref2 = reference_forward(x2, params)
    np.testing.assert_allclose(np.asarray(out2), np.asarray(ref2),
                               rtol=4e-3, atol=4e-3)

    # Exact softmax epilogue: rows sum to 1 to f32 roundoff.
    np.testing.assert_allclose(np.asarray(out1).sum(axis=1), np.ones(B),
                               rtol=1e-5, atol=1e-5)
    np.testing.assert_allclose(np.asarray(out2).sum(axis=1), np.ones(B),
                               rtol=1e-5, atol=1e-5)

    print("KERNEL_OK")
</pallas_src>

<mosaic_0001>
module attributes {stable_mosaic.version = 11 : i64} {
  func.func @kernel(%arg0: i32, %arg1: i32, %arg2: memref<2x8x768xf32, #tpu.memory_space<vmem>>, %arg3: memref<768x128xbf16, #tpu.memory_space<vmem>>, %arg4: memref<1x128xf32, #tpu.memory_space<vmem>>, %arg5: memref<128x512xbf16, #tpu.memory_space<vmem>>, %arg6: memref<128x512xbf16, #tpu.memory_space<vmem>>, %arg7: memref<1x512xf32, #tpu.memory_space<vmem>>, %arg8: memref<128x8xf32, #tpu.memory_space<vmem>>, %arg9: memref<1x8xf32, #tpu.memory_space<vmem>>, %arg10: memref<2x8xf32, #tpu.memory_space<vmem>>, %arg11: memref<2x128xf32, #tpu.memory_space<vmem>>, %arg12: memref<2x128xf32, #tpu.memory_space<vmem>>, %arg13: memref<2x128xf32, #tpu.memory_space<vmem>>, %arg14: memref<16x512xf32, #tpu.memory_space<vmem>>) attributes {dimension_semantics = [#tpu.dimension_semantics<parallel>, #tpu.dimension_semantics<arbitrary>], iteration_bounds = array<i64: 1, 1>, scalar_prefetch = 0 : i64, scratch_operands = 4 : i64, tpu.core_type = #tpu.core_type<tc>, window_params = [{transform_indices = @transform_0, window_bounds = array<i64: 2, 8, 768>}, {pipeline_mode = #tpu.pipeline_mode<synchronous>, transform_indices = @transform_1, window_bounds = array<i64: 768, 128>}, {pipeline_mode = #tpu.pipeline_mode<synchronous>, transform_indices = @transform_2, window_bounds = array<i64: 1, 128>}, {pipeline_mode = #tpu.pipeline_mode<synchronous>, transform_indices = @transform_3, window_bounds = array<i64: 128, 512>}, {pipeline_mode = #tpu.pipeline_mode<synchronous>, transform_indices = @transform_4, window_bounds = array<i64: 128, 512>}, {pipeline_mode = #tpu.pipeline_mode<synchronous>, transform_indices = @transform_5, window_bounds = array<i64: 1, 512>}, {pipeline_mode = #tpu.pipeline_mode<synchronous>, transform_indices = @transform_6, window_bounds = array<i64: 128, 8>}, {pipeline_mode = #tpu.pipeline_mode<synchronous>, transform_indices = @transform_7, window_bounds = array<i64: 1, 8>}, {transform_indices = @transform_8, window_bounds = array<i64: 2, 8>}]} {
    %c0_i32 = arith.constant 0 : i32
    %0 = arith.cmpi eq, %arg1, %c0_i32 : i32
    %1 = arith.extui %0 : i1 to i32
    %c0_i32_0 = arith.constant 0 : i32
    %2 = arith.cmpi ne, %1, %c0_i32_0 : i32
    scf.if %2 {
      %cst_134 = arith.constant 0.000000e+00 : f32
      %301 = vector.broadcast %cst_134 : f32 to vector<2x128xf32>
      %c0_135 = arith.constant 0 : index
      %c0_136 = arith.constant 0 : index
      %302 = vector.load %arg11[%c0_135, %c0_136] : memref<2x128xf32, #tpu.memory_space<vmem>>, vector<2x128xf32>
      tpu.vector_store %arg11[%c0_135, %c0_136], %301 {strides = array<i32>} : memref<2x128xf32, #tpu.memory_space<vmem>>, vector<2x128xf32>,
      %cst_137 = arith.constant 0.000000e+00 : f32
      %303 = vector.broadcast %cst_137 : f32 to vector<2x128xf32>
      %c0_138 = arith.constant 0 : index
      %c0_139 = arith.constant 0 : index
      %304 = vector.load %arg12[%c0_138, %c0_139] : memref<2x128xf32, #tpu.memory_space<vmem>>, vector<2x128xf32>
      tpu.vector_store %arg12[%c0_138, %c0_139], %303 {strides = array<i32>} : memref<2x128xf32, #tpu.memory_space<vmem>>, vector<2x128xf32>,
      %cst_140 = arith.constant 0xFF800000 : f32
      %305 = vector.broadcast %cst_140 : f32 to vector<2x128xf32>
      %c0_141 = arith.constant 0 : index
      %c0_142 = arith.constant 0 : index
      %306 = vector.load %arg13[%c0_141, %c0_142] : memref<2x128xf32, #tpu.memory_space<vmem>>, vector<2x128xf32>
      tpu.vector_store %arg13[%c0_141, %c0_142], %305 {strides = array<i32>} : memref<2x128xf32, #tpu.memory_space<vmem>>, vector<2x128xf32>,
    } else {
    }
    %c0 = arith.constant 0 : index
    %c0_1 = arith.constant 0 : index
    %c0_2 = arith.constant 0 : index
    %3 = vector.load %arg2[%c0, %c0_1, %c0_2] : memref<2x8x768xf32, #tpu.memory_space<vmem>>, vector<2x8x768xf32>
    %4 = arith.truncf %3 : vector<2x8x768xf32> to vector<2x8x768xbf16>
    %5 = vector.shape_cast %4 : vector<2x8x768xbf16> to vector<16x768xbf16>
    %c0_3 = arith.constant 0 : index
    %c0_4 = arith.constant 0 : index
    %6 = vector.load %arg3[%c0_3, %c0_4] : memref<768x128xbf16, #tpu.memory_space<vmem>>, vector<768x128xbf16>
    %cst = arith.constant dense<0.000000e+00> : vector<16x128xf32>
    %7 = tpu.matmul %5, %6, %cst {dimension_numbers = #tpu.dot_dimension_numbers<[1], [0], [0], [1], [0, 0, 1, 1], [], []>} : vector<16x768xbf16>, vector<768x128xbf16>, vector<16x128xf32> -> vector<16x128xf32>
    %c0_5 = arith.constant 0 : index
    %c0_6 = arith.constant 0 : index
    %8 = vector.load %arg4[%c0_5, %c0_6] : memref<1x128xf32, #tpu.memory_space<vmem>>, vector<1x128xf32>
    %9 = vector.broadcast %8 : vector<1x128xf32> to vector<16x128xf32>
    %10 = arith.addf %7, %9 : vector<16x128xf32>
    %cst_7 = arith.constant 0.000000e+00 : f32
    %11 = vector.broadcast %cst_7 : f32 to vector<16x128xf32>
    %12 = arith.maximumf %10, %11 : vector<16x128xf32>
    %13 = arith.truncf %12 : vector<16x128xf32> to vector<16x128xbf16>
    %c0_8 = arith.constant 0 : index
    %c0_9 = arith.constant 0 : index
    %14 = vector.load %arg5[%c0_8, %c0_9] : memref<128x512xbf16, #tpu.memory_space<vmem>>, vector<128x512xbf16>
    %cst_10 = arith.constant dense<0.000000e+00> : vector<16x512xf32>
    %15 = tpu.matmul %13, %14, %cst_10 {dimension_numbers = #tpu.dot_dimension_numbers<[1], [0], [0], [1], [0, 0, 1, 1], [], []>} : vector<16x128xbf16>, vector<128x512xbf16>, vector<16x512xf32> -> vector<16x512xf32>
    %c0_11 = arith.constant 0 : index
    %c0_12 = arith.constant 0 : index
    %16 = vector.load %arg7[%c0_11, %c0_12] : memref<1x512xf32, #tpu.memory_space<vmem>>, vector<1x512xf32>
    %17 = vector.broadcast %16 : vector<1x512xf32> to vector<16x512xf32>
    %18 = arith.addf %15, %17 : vector<16x512xf32>
    %c0_13 = arith.constant 0 : index
    %c0_14 = arith.constant 0 : index
    %19 = vector.load %arg14[%c0_13, %c0_14] : memref<16x512xf32, #tpu.memory_space<vmem>>, vector<16x512xf32>
    tpu.vector_store %arg14[%c0_13, %c0_14], %18 {strides = array<i32>} : memref<16x512xf32, #tpu.memory_space<vmem>>, vector<16x512xf32>,
    %c0_15 = arith.constant 0 : index
    %c0_16 = arith.constant 0 : index
    %20 = vector.load %arg11[%c0_15, %c0_16] : memref<2x128xf32, #tpu.memory_space<vmem>>, vector<2x128xf32>
    %c0_17 = arith.constant 0 : index
    %c0_18 = arith.constant 0 : index
    %21 = vector.load %arg12[%c0_17, %c0_18] : memref<2x128xf32, #tpu.memory_space<vmem>>, vector<2x128xf32>
    %c0_19 = arith.constant 0 : index
    %c0_20 = arith.constant 0 : index
    %22 = vector.load %arg13[%c0_19, %c0_20] : memref<2x128xf32, #tpu.memory_space<vmem>>, vector<2x128xf32>
    %c0_i32_21 = arith.constant 0 : i32
    %c0_i32_22 = arith.constant 0 : i32
    %23 = arith.addi %c0_i32_22, %c0_i32_21 : i32
    %24 = arith.index_cast %23 : i32 to index
    %c0_23 = arith.constant 0 : index
    %25 = vector.load %arg14[%24, %c0_23] : memref<16x512xf32, #tpu.memory_space<vmem>>, vector<1x512xf32>
    %c8_i32 = arith.constant 8 : i32
    %26 = arith.addi %c8_i32, %c0_i32_21 : i32
    %27 = arith.index_cast %26 : i32 to index
    %c0_24 = arith.constant 0 : index
    %28 = vector.load %arg14[%27, %c0_24] : memref<16x512xf32, #tpu.memory_space<vmem>>, vector<1x512xf32>
    %29 = tpu.concatenate %25, %28 in 0 : vector<1x512xf32>, vector<1x512xf32> -> vector<2x512xf32>
    %30 = arith.truncf %20 : vector<2x128xf32> to vector<2x128xbf16>
    %c0_25 = arith.constant 0 : index
    %c0_26 = arith.constant 0 : index
    %31 = vector.load %arg6[%c0_25, %c0_26] : memref<128x512xbf16, #tpu.memory_space<vmem>>, vector<128x512xbf16>
    %cst_27 = arith.constant dense<0.000000e+00> : vector<2x512xf32>
    %32 = tpu.matmul %30, %31, %cst_27 {dimension_numbers = #tpu.dot_dimension_numbers<[1], [0], [0], [1], [0, 0, 1, 1], [], []>} : vector<2x128xbf16>, vector<128x512xbf16>, vector<2x512xf32> -> vector<2x512xf32>
    %33 = arith.addf %29, %32 : vector<2x512xf32>
    %34 = math.tanh %33 : vector<2x512xf32>
    %35 = vector.extract_strided_slice %34 {offsets = [0, 0], sizes = [2, 128], strides = [1, 1]} : vector<2x512xf32> to vector<2x128xf32>
    %cst_28 = arith.constant 5.000000e-01 : f32
    %36 = vector.broadcast %cst_28 : f32 to vector<2x128xf32>
    %37 = arith.mulf %36, %35 : vector<2x128xf32>
    %cst_29 = arith.constant 5.000000e-01 : f32
    %38 = vector.broadcast %cst_29 : f32 to vector<2x128xf32>
    %39 = arith.addf %37, %38 : vector<2x128xf32>
    %40 = vector.extract_strided_slice %34 {offsets = [0, 128], sizes = [2, 128], strides = [1, 1]} : vector<2x512xf32> to vector<2x128xf32>
    %cst_30 = arith.constant 5.000000e-01 : f32
    %41 = vector.broadcast %cst_30 : f32 to vector<2x128xf32>
    %42 = arith.mulf %41, %40 : vector<2x128xf32>
    %cst_31 = arith.constant 5.000000e-01 : f32
    %43 = vector.broadcast %cst_31 : f32 to vector<2x128xf32>
    %44 = arith.addf %42, %43 : vector<2x128xf32>
    %45 = vector.extract_strided_slice %34 {offsets = [0, 256], sizes = [2, 128], strides = [1, 1]} : vector<2x512xf32> to vector<2x128xf32>
    %46 = vector.extract_strided_slice %34 {offsets = [0, 384], sizes = [2, 128], strides = [1, 1]} : vector<2x512xf32> to vector<2x128xf32>
    %cst_32 = arith.constant 5.000000e-01 : f32
    %47 = vector.broadcast %cst_32 : f32 to vector<2x128xf32>
    %48 = arith.mulf %47, %46 : vector<2x128xf32>
    %cst_33 = arith.constant 5.000000e-01 : f32
    %49 = vector.broadcast %cst_33 : f32 to vector<2x128xf32>
    %50 = arith.addf %48, %49 : vector<2x128xf32>
    %51 = arith.mulf %44, %21 : vector<2x128xf32>
    %52 = arith.mulf %39, %45 : vector<2x128xf32>
    %53 = arith.addf %51, %52 : vector<2x128xf32>
    %54 = math.tanh %53 : vector<2x128xf32>
    %55 = arith.mulf %50, %54 : vector<2x128xf32>
    %56 = arith.maximumf %22, %55 : vector<2x128xf32>
    %c1_i32 = arith.constant 1 : i32
    %c0_i32_34 = arith.constant 0 : i32
    %57 = arith.addi %c0_i32_34, %c1_i32 : i32
    %58 = arith.index_cast %57 : i32 to index
    %c0_35 = arith.constant 0 : index
    %59 = vector.load %arg14[%58, %c0_35] : memref<16x512xf32, #tpu.memory_space<vmem>>, vector<1x512xf32>
    %c8_i32_36 = arith.constant 8 : i32
    %60 = arith.addi %c8_i32_36, %c1_i32 : i32
    %61 = arith.index_cast %60 : i32 to index
    %c0_37 = arith.constant 0 : index
    %62 = vector.load %arg14[%61, %c0_37] : memref<16x512xf32, #tpu.memory_space<vmem>>, vector<1x512xf32>
    %63 = tpu.concatenate %59, %62 in 0 : vector<1x512xf32>, vector<1x512xf32> -> vector<2x512xf32>
    %64 = arith.truncf %55 : vector<2x128xf32> to vector<2x128xbf16>
    %c0_38 = arith.constant 0 : index
    %c0_39 = arith.constant 0 : index
    %65 = vector.load %arg6[%c0_38, %c0_39] : memref<128x512xbf16, #tpu.memory_space<vmem>>, vector<128x512xbf16>
    %cst_40 = arith.constant dense<0.000000e+00> : vector<2x512xf32>
    %66 = tpu.matmul %64, %65, %cst_40 {dimension_numbers = #tpu.dot_dimension_numbers<[1], [0], [0], [1], [0, 0, 1, 1], [], []>} : vector<2x128xbf16>, vector<128x512xbf16>, vector<2x512xf32> -> vector<2x512xf32>
    %67 = arith.addf %63, %66 : vector<2x512xf32>
    %68 = math.tanh %67 : vector<2x512xf32>
    %69 = vector.extract_strided_slice %68 {offsets = [0, 0], sizes = [2, 128], strides = [1, 1]} : vector<2x512xf32> to vector<2x128xf32>
    %cst_41 = arith.constant 5.000000e-01 : f32
    %70 = vector.broadcast %cst_41 : f32 to vector<2x128xf32>
    %71 = arith.mulf %70, %69 : vector<2x128xf32>
    %cst_42 = arith.constant 5.000000e-01 : f32
    %72 = vector.broadcast %cst_42 : f32 to vector<2x128xf32>
    %73 = arith.addf %71, %72 : vector<2x128xf32>
    %74 = vector.extract_strided_slice %68 {offsets = [0, 128], sizes = [2, 128], strides = [1, 1]} : vector<2x512xf32> to vector<2x128xf32>
    %cst_43 = arith.constant 5.000000e-01 : f32
    %75 = vector.broadcast %cst_43 : f32 to vector<2x128xf32>
    %76 = arith.mulf %75, %74 : vector<2x128xf32>
    %cst_44 = arith.constant 5.000000e-01 : f32
    %77 = vector.broadcast %cst_44 : f32 to vector<2x128xf32>
    %78 = arith.addf %76, %77 : vector<2x128xf32>
    %79 = vector.extract_strided_slice %68 {offsets = [0, 256], sizes = [2, 128], strides = [1, 1]} : vector<2x512xf32> to vector<2x128xf32>
    %80 = vector.extract_strided_slice %68 {offsets = [0, 384], sizes = [2, 128], strides = [1, 1]} : vector<2x512xf32> to vector<2x128xf32>
    %cst_45 = arith.constant 5.000000e-01 : f32
    %81 = vector.broadcast %cst_45 : f32 to vector<2x128xf32>
    %82 = arith.mulf %81, %80 : vector<2x128xf32>
    %cst_46 = arith.constant 5.000000e-01 : f32
    %83 = vector.broadcast %cst_46 : f32 to vector<2x128xf32>
    %84 = arith.addf %82, %83 : vector<2x128xf32>
    %85 = arith.mulf %78, %53 : vector<2x128xf32>
    %86 = arith.mulf %73, %79 : vector<2x128xf32>
    %87 = arith.addf %85, %86 : vector<2x128xf32>
    %88 = math.tanh %87 : vector<2x128xf32>
    %89 = arith.mulf %84, %88 : vector<2x128xf32>
    %90 = arith.maximumf %56, %89 : vector<2x128xf32>
    %c2_i32 = arith.constant 2 : i32
    %c0_i32_47 = arith.constant 0 : i32
    %91 = arith.addi %c0_i32_47, %c2_i32 : i32
    %92 = arith.index_cast %91 : i32 to index
    %c0_48 = arith.constant 0 : index
    %93 = vector.load %arg14[%92, %c0_48] : memref<16x512xf32, #tpu.memory_space<vmem>>, vector<1x512xf32>
    %c8_i32_49 = arith.constant 8 : i32
    %94 = arith.addi %c8_i32_49, %c2_i32 : i32
    %95 = arith.index_cast %94 : i32 to index
    %c0_50 = arith.constant 0 : index
    %96 = vector.load %arg14[%95, %c0_50] : memref<16x512xf32, #tpu.memory_space<vmem>>, vector<1x512xf32>
    %97 = tpu.concatenate %93, %96 in 0 : vector<1x512xf32>, vector<1x512xf32> -> vector<2x512xf32>
    %98 = arith.truncf %89 : vector<2x128xf32> to vector<2x128xbf16>
    %c0_51 = arith.constant 0 : index
    %c0_52 = arith.constant 0 : index
    %99 = vector.load %arg6[%c0_51, %c0_52] : memref<128x512xbf16, #tpu.memory_space<vmem>>, vector<128x512xbf16>
    %cst_53 = arith.constant dense<0.000000e+00> : vector<2x512xf32>
    %100 = tpu.matmul %98, %99, %cst_53 {dimension_numbers = #tpu.dot_dimension_numbers<[1], [0], [0], [1], [0, 0, 1, 1], [], []>} : vector<2x128xbf16>, vector<128x512xbf16>, vector<2x512xf32> -> vector<2x512xf32>
    %101 = arith.addf %97, %100 : vector<2x512xf32>
    %102 = math.tanh %101 : vector<2x512xf32>
    %103 = vector.extract_strided_slice %102 {offsets = [0, 0], sizes = [2, 128], strides = [1, 1]} : vector<2x512xf32> to vector<2x128xf32>
    %cst_54 = arith.constant 5.000000e-01 : f32
    %104 = vector.broadcast %cst_54 : f32 to vector<2x128xf32>
    %105 = arith.mulf %104, %103 : vector<2x128xf32>
    %cst_55 = arith.constant 5.000000e-01 : f32
    %106 = vector.broadcast %cst_55 : f32 to vector<2x128xf32>
    %107 = arith.addf %105, %106 : vector<2x128xf32>
    %108 = vector.extract_strided_slice %102 {offsets = [0, 128], sizes = [2, 128], strides = [1, 1]} : vector<2x512xf32> to vector<2x128xf32>
    %cst_56 = arith.constant 5.000000e-01 : f32
    %109 = vector.broadcast %cst_56 : f32 to vector<2x128xf32>
    %110 = arith.mulf %109, %108 : vector<2x128xf32>
    %cst_57 = arith.constant 5.000000e-01 : f32
    %111 = vector.broadcast %cst_57 : f32 to vector<2x128xf32>
    %112 = arith.addf %110, %111 : vector<2x128xf32>
    %113 = vector.extract_strided_slice %102 {offsets = [0, 256], sizes = [2, 128], strides = [1, 1]} : vector<2x512xf32> to vector<2x128xf32>
    %114 = vector.extract_strided_slice %102 {offsets = [0, 384], sizes = [2, 128], strides = [1, 1]} : vector<2x512xf32> to vector<2x128xf32>
    %cst_58 = arith.constant 5.000000e-01 : f32
    %115 = vector.broadcast %cst_58 : f32 to vector<2x128xf32>
    %116 = arith.mulf %115, %114 : vector<2x128xf32>
    %cst_59 = arith.constant 5.000000e-01 : f32
    %117 = vector.broadcast %cst_59 : f32 to vector<2x128xf32>
    %118 = arith.addf %116, %117 : vector<2x128xf32>
    %119 = arith.mulf %112, %87 : vector<2x128xf32>
    %120 = arith.mulf %107, %113 : vector<2x128xf32>
    %121 = arith.addf %119, %120 : vector<2x128xf32>
    %122 = math.tanh %121 : vector<2x128xf32>
    %123 = arith.mulf %118, %122 : vector<2x128xf32>
    %124 = arith.maximumf %90, %123 : vector<2x128xf32>
    %c3_i32 = arith.constant 3 : i32
    %c0_i32_60 = arith.constant 0 : i32
    %125 = arith.addi %c0_i32_60, %c3_i32 : i32
    %126 = arith.index_cast %125 : i32 to index
    %c0_61 = arith.constant 0 : index
    %127 = vector.load %arg14[%126, %c0_61] : memref<16x512xf32, #tpu.memory_space<vmem>>, vector<1x512xf32>
    %c8_i32_62 = arith.constant 8 : i32
    %128 = arith.addi %c8_i32_62, %c3_i32 : i32
    %129 = arith.index_cast %128 : i32 to index
    %c0_63 = arith.constant 0 : index
    %130 = vector.load %arg14[%129, %c0_63] : memref<16x512xf32, #tpu.memory_space<vmem>>, vector<1x512xf32>
    %131 = tpu.concatenate %127, %130 in 0 : vector<1x512xf32>, vector<1x512xf32> -> vector<2x512xf32>
    %132 = arith.truncf %123 : vector<2x128xf32> to vector<2x128xbf16>
    %c0_64 = arith.constant 0 : index
    %c0_65 = arith.constant 0 : index
    %133 = vector.load %arg6[%c0_64, %c0_65] : memref<128x512xbf16, #tpu.memory_space<vmem>>, vector<128x512xbf16>
    %cst_66 = arith.constant dense<0.000000e+00> : vector<2x512xf32>
    %134 = tpu.matmul %132, %133, %cst_66 {dimension_numbers = #tpu.dot_dimension_numbers<[1], [0], [0], [1], [0, 0, 1, 1], [], []>} : vector<2x128xbf16>, vector<128x512xbf16>, vector<2x512xf32> -> vector<2x512xf32>
    %135 = arith.addf %131, %134 : vector<2x512xf32>
    %136 = math.tanh %135 : vector<2x512xf32>
    %137 = vector.extract_strided_slice %136 {offsets = [0, 0], sizes = [2, 128], strides = [1, 1]} : vector<2x512xf32> to vector<2x128xf32>
    %cst_67 = arith.constant 5.000000e-01 : f32
    %138 = vector.broadcast %cst_67 : f32 to vector<2x128xf32>
    %139 = arith.mulf %138, %137 : vector<2x128xf32>
    %cst_68 = arith.constant 5.000000e-01 : f32
    %140 = vector.broadcast %cst_68 : f32 to vector<2x128xf32>
    %141 = arith.addf %139, %140 : vector<2x128xf32>
    %142 = vector.extract_strided_slice %136 {offsets = [0, 128], sizes = [2, 128], strides = [1, 1]} : vector<2x512xf32> to vector<2x128xf32>
    %cst_69 = arith.constant 5.000000e-01 : f32
    %143 = vector.broadcast %cst_69 : f32 to vector<2x128xf32>
    %144 = arith.mulf %143, %142 : vector<2x128xf32>
    %cst_70 = arith.constant 5.000000e-01 : f32
    %145 = vector.broadcast %cst_70 : f32 to vector<2x128xf32>
    %146 = arith.addf %144, %145 : vector<2x128xf32>
    %147 = vector.extract_strided_slice %136 {offsets = [0, 256], sizes = [2, 128], strides = [1, 1]} : vector<2x512xf32> to vector<2x128xf32>
    %148 = vector.extract_strided_slice %136 {offsets = [0, 384], sizes = [2, 128], strides = [1, 1]} : vector<2x512xf32> to vector<2x128xf32>
    %cst_71 = arith.constant 5.000000e-01 : f32
    %149 = vector.broadcast %cst_71 : f32 to vector<2x128xf32>
    %150 = arith.mulf %149, %148 : vector<2x128xf32>
    %cst_72 = arith.constant 5.000000e-01 : f32
    %151 = vector.broadcast %cst_72 : f32 to vector<2x128xf32>
    %152 = arith.addf %150, %151 : vector<2x128xf32>
    %153 = arith.mulf %146, %121 : vector<2x128xf32>
    %154 = arith.mulf %141, %147 : vector<2x128xf32>
    %155 = arith.addf %153, %154 : vector<2x128xf32>
    %156 = math.tanh %155 : vector<2x128xf32>
    %157 = arith.mulf %152, %156 : vector<2x128xf32>
    %158 = arith.maximumf %124, %157 : vector<2x128xf32>
    %c4_i32 = arith.constant 4 : i32
    %c0_i32_73 = arith.constant 0 : i32
    %159 = arith.addi %c0_i32_73, %c4_i32 : i32
    %160 = arith.index_cast %159 : i32 to index
    %c0_74 = arith.constant 0 : index
    %161 = vector.load %arg14[%160, %c0_74] : memref<16x512xf32, #tpu.memory_space<vmem>>, vector<1x512xf32>
    %c8_i32_75 = arith.constant 8 : i32
    %162 = arith.addi %c8_i32_75, %c4_i32 : i32
    %163 = arith.index_cast %162 : i32 to index
    %c0_76 = arith.constant 0 : index
    %164 = vector.load %arg14[%163, %c0_76] : memref<16x512xf32, #tpu.memory_space<vmem>>, vector<1x512xf32>
    %165 = tpu.concatenate %161, %164 in 0 : vector<1x512xf32>, vector<1x512xf32> -> vector<2x512xf32>
    %166 = arith.truncf %157 : vector<2x128xf32> to vector<2x128xbf16>
    %c0_77 = arith.constant 0 : index
    %c0_78 = arith.constant 0 : index
    %167 = vector.load %arg6[%c0_77, %c0_78] : memref<128x512xbf16, #tpu.memory_space<vmem>>, vector<128x512xbf16>
    %cst_79 = arith.constant dense<0.000000e+00> : vector<2x512xf32>
    %168 = tpu.matmul %166, %167, %cst_79 {dimension_numbers = #tpu.dot_dimension_numbers<[1], [0], [0], [1], [0, 0, 1, 1], [], []>} : vector<2x128xbf16>, vector<128x512xbf16>, vector<2x512xf32> -> vector<2x512xf32>
    %169 = arith.addf %165, %168 : vector<2x512xf32>
    %170 = math.tanh %169 : vector<2x512xf32>
    %171 = vector.extract_strided_slice %170 {offsets = [0, 0], sizes = [2, 128], strides = [1, 1]} : vector<2x512xf32> to vector<2x128xf32>
    %cst_80 = arith.constant 5.000000e-01 : f32
    %172 = vector.broadcast %cst_80 : f32 to vector<2x128xf32>
    %173 = arith.mulf %172, %171 : vector<2x128xf32>
    %cst_81 = arith.constant 5.000000e-01 : f32
    %174 = vector.broadcast %cst_81 : f32 to vector<2x128xf32>
    %175 = arith.addf %173, %174 : vector<2x128xf32>
    %176 = vector.extract_strided_slice %170 {offsets = [0, 128], sizes = [2, 128], strides = [1, 1]} : vector<2x512xf32> to vector<2x128xf32>
    %cst_82 = arith.constant 5.000000e-01 : f32
    %177 = vector.broadcast %cst_82 : f32 to vector<2x128xf32>
    %178 = arith.mulf %177, %176 : vector<2x128xf32>
    %cst_83 = arith.constant 5.000000e-01 : f32
    %179 = vector.broadcast %cst_83 : f32 to vector<2x128xf32>
    %180 = arith.addf %178, %179 : vector<2x128xf32>
    %181 = vector.extract_strided_slice %170 {offsets = [0, 256], sizes = [2, 128], strides = [1, 1]} : vector<2x512xf32> to vector<2x128xf32>
    %182 = vector.extract_strided_slice %170 {offsets = [0, 384], sizes = [2, 128], strides = [1, 1]} : vector<2x512xf32> to vector<2x128xf32>
    %cst_84 = arith.constant 5.000000e-01 : f32
    %183 = vector.broadcast %cst_84 : f32 to vector<2x128xf32>
    %184 = arith.mulf %183, %182 : vector<2x128xf32>
    %cst_85 = arith.constant 5.000000e-01 : f32
    %185 = vector.broadcast %cst_85 : f32 to vector<2x128xf32>
    %186 = arith.addf %184, %185 : vector<2x128xf32>
    %187 = arith.mulf %180, %155 : vector<2x128xf32>
    %188 = arith.mulf %175, %181 : vector<2x128xf32>
    %189 = arith.addf %187, %188 : vector<2x128xf32>
    %190 = math.tanh %189 : vector<2x128xf32>
    %191 = arith.mulf %186, %190 : vector<2x128xf32>
    %192 = arith.maximumf %158, %191 : vector<2x128xf32>
    %c5_i32 = arith.constant 5 : i32
    %c0_i32_86 = arith.constant 0 : i32
    %193 = arith.addi %c0_i32_86, %c5_i32 : i32
    %194 = arith.index_cast %193 : i32 to index
    %c0_87 = arith.constant 0 : index
    %195 = vector.load %arg14[%194, %c0_87] : memref<16x512xf32, #tpu.memory_space<vmem>>, vector<1x512xf32>
    %c8_i32_88 = arith.constant 8 : i32
    %196 = arith.addi %c8_i32_88, %c5_i32 : i32
    %197 = arith.index_cast %196 : i32 to index
    %c0_89 = arith.constant 0 : index
    %198 = vector.load %arg14[%197, %c0_89] : memref<16x512xf32, #tpu.memory_space<vmem>>, vector<1x512xf32>
    %199 = tpu.concatenate %195, %198 in 0 : vector<1x512xf32>, vector<1x512xf32> -> vector<2x512xf32>
    %200 = arith.truncf %191 : vector<2x128xf32> to vector<2x128xbf16>
    %c0_90 = arith.constant 0 : index
    %c0_91 = arith.constant 0 : index
    %201 = vector.load %arg6[%c0_90, %c0_91] : memref<128x512xbf16, #tpu.memory_space<vmem>>, vector<128x512xbf16>
    %cst_92 = arith.constant dense<0.000000e+00> : vector<2x512xf32>
    %202 = tpu.matmul %200, %201, %cst_92 {dimension_numbers = #tpu.dot_dimension_numbers<[1], [0], [0], [1], [0, 0, 1, 1], [], []>} : vector<2x128xbf16>, vector<128x512xbf16>, vector<2x512xf32> -> vector<2x512xf32>
    %203 = arith.addf %199, %202 : vector<2x512xf32>
    %204 = math.tanh %203 : vector<2x512xf32>
    %205 = vector.extract_strided_slice %204 {offsets = [0, 0], sizes = [2, 128], strides = [1, 1]} : vector<2x512xf32> to vector<2x128xf32>
    %cst_93 = arith.constant 5.000000e-01 : f32
    %206 = vector.broadcast %cst_93 : f32 to vector<2x128xf32>
    %207 = arith.mulf %206, %205 : vector<2x128xf32>
    %cst_94 = arith.constant 5.000000e-01 : f32
    %208 = vector.broadcast %cst_94 : f32 to vector<2x128xf32>
    %209 = arith.addf %207, %208 : vector<2x128xf32>
    %210 = vector.extract_strided_slice %204 {offsets = [0, 128], sizes = [2, 128], strides = [1, 1]} : vector<2x512xf32> to vector<2x128xf32>
    %cst_95 = arith.constant 5.000000e-01 : f32
    %211 = vector.broadcast %cst_95 : f32 to vector<2x128xf32>
    %212 = arith.mulf %211, %210 : vector<2x128xf32>
    %cst_96 = arith.constant 5.000000e-01 : f32
    %213 = vector.broadcast %cst_96 : f32 to vector<2x128xf32>
    %214 = arith.addf %212, %213 : vector<2x128xf32>
    %215 = vector.extract_strided_slice %204 {offsets = [0, 256], sizes = [2, 128], strides = [1, 1]} : vector<2x512xf32> to vector<2x128xf32>
    %216 = vector.extract_strided_slice %204 {offsets = [0, 384], sizes = [2, 128], strides = [1, 1]} : vector<2x512xf32> to vector<2x128xf32>
    %cst_97 = arith.constant 5.000000e-01 : f32
    %217 = vector.broadcast %cst_97 : f32 to vector<2x128xf32>
    %218 = arith.mulf %217, %216 : vector<2x128xf32>
    %cst_98 = arith.constant 5.000000e-01 : f32
    %219 = vector.broadcast %cst_98 : f32 to vector<2x128xf32>
    %220 = arith.addf %218, %219 : vector<2x128xf32>
    %221 = arith.mulf %214, %189 : vector<2x128xf32>
    %222 = arith.mulf %209, %215 : vector<2x128xf32>
    %223 = arith.addf %221, %222 : vector<2x128xf32>
    %224 = math.tanh %223 : vector<2x128xf32>
    %225 = arith.mulf %220, %224 : vector<2x128xf32>
    %226 = arith.maximumf %192, %225 : vector<2x128xf32>
    %c6_i32 = arith.constant 6 : i32
    %c0_i32_99 = arith.constant 0 : i32
    %227 = arith.addi %c0_i32_99, %c6_i32 : i32
    %228 = arith.index_cast %227 : i32 to index
    %c0_100 = arith.constant 0 : index
    %229 = vector.load %arg14[%228, %c0_100] : memref<16x512xf32, #tpu.memory_space<vmem>>, vector<1x512xf32>
    %c8_i32_101 = arith.constant 8 : i32
    %230 = arith.addi %c8_i32_101, %c6_i32 : i32
    %231 = arith.index_cast %230 : i32 to index
    %c0_102 = arith.constant 0 : index
    %232 = vector.load %arg14[%231, %c0_102] : memref<16x512xf32, #tpu.memory_space<vmem>>, vector<1x512xf32>
    %233 = tpu.concatenate %229, %232 in 0 : vector<1x512xf32>, vector<1x512xf32> -> vector<2x512xf32>
    %234 = arith.truncf %225 : vector<2x128xf32> to vector<2x128xbf16>
    %c0_103 = arith.constant 0 : index
    %c0_104 = arith.constant 0 : index
    %235 = vector.load %arg6[%c0_103, %c0_104] : memref<128x512xbf16, #tpu.memory_space<vmem>>, vector<128x512xbf16>
    %cst_105 = arith.constant dense<0.000000e+00> : vector<2x512xf32>
    %236 = tpu.matmul %234, %235, %cst_105 {dimension_numbers = #tpu.dot_dimension_numbers<[1], [0], [0], [1], [0, 0, 1, 1], [], []>} : vector<2x128xbf16>, vector<128x512xbf16>, vector<2x512xf32> -> vector<2x512xf32>
    %237 = arith.addf %233, %236 : vector<2x512xf32>
    %238 = math.tanh %237 : vector<2x512xf32>
    %239 = vector.extract_strided_slice %238 {offsets = [0, 0], sizes = [2, 128], strides = [1, 1]} : vector<2x512xf32> to vector<2x128xf32>
    %cst_106 = arith.constant 5.000000e-01 : f32
    %240 = vector.broadcast %cst_106 : f32 to vector<2x128xf32>
    %241 = arith.mulf %240, %239 : vector<2x128xf32>
    %cst_107 = arith.constant 5.000000e-01 : f32
    %242 = vector.broadcast %cst_107 : f32 to vector<2x128xf32>
    %243 = arith.addf %241, %242 : vector<2x128xf32>
    %244 = vector.extract_strided_slice %238 {offsets = [0, 128], sizes = [2, 128], strides = [1, 1]} : vector<2x512xf32> to vector<2x128xf32>
    %cst_108 = arith.constant 5.000000e-01 : f32
    %245 = vector.broadcast %cst_108 : f32 to vector<2x128xf32>
    %246 = arith.mulf %245, %244 : vector<2x128xf32>
    %cst_109 = arith.constant 5.000000e-01 : f32
    %247 = vector.broadcast %cst_109 : f32 to vector<2x128xf32>
    %248 = arith.addf %246, %247 : vector<2x128xf32>
    %249 = vector.extract_strided_slice %238 {offsets = [0, 256], sizes = [2, 128], strides = [1, 1]} : vector<2x512xf32> to vector<2x128xf32>
    %250 = vector.extract_strided_slice %238 {offsets = [0, 384], sizes = [2, 128], strides = [1, 1]} : vector<2x512xf32> to vector<2x128xf32>
    %cst_110 = arith.constant 5.000000e-01 : f32
    %251 = vector.broadcast %cst_110 : f32 to vector<2x128xf32>
    %252 = arith.mulf %251, %250 : vector<2x128xf32>
    %cst_111 = arith.constant 5.000000e-01 : f32
    %253 = vector.broadcast %cst_111 : f32 to vector<2x128xf32>
    %254 = arith.addf %252, %253 : vector<2x128xf32>
    %255 = arith.mulf %248, %223 : vector<2x128xf32>
    %256 = arith.mulf %243, %249 : vector<2x128xf32>
    %257 = arith.addf %255, %256 : vector<2x128xf32>
    %258 = math.tanh %257 : vector<2x128xf32>
    %259 = arith.mulf %254, %258 : vector<2x128xf32>
    %260 = arith.maximumf %226, %259 : vector<2x128xf32>
    %c7_i32 = arith.constant 7 : i32
    %c0_i32_112 = arith.constant 0 : i32
    %261 = arith.addi %c0_i32_112, %c7_i32 : i32
    %262 = arith.index_cast %261 : i32 to index
    %c0_113 = arith.constant 0 : index
    %263 = vector.load %arg14[%262, %c0_113] : memref<16x512xf32, #tpu.memory_space<vmem>>, vector<1x512xf32>
    %c8_i32_114 = arith.constant 8 : i32
    %264 = arith.addi %c8_i32_114, %c7_i32 : i32
    %265 = arith.index_cast %264 : i32 to index
    %c0_115 = arith.constant 0 : index
    %266 = vector.load %arg14[%265, %c0_115] : memref<16x512xf32, #tpu.memory_space<vmem>>, vector<1x512xf32>
    %267 = tpu.concatenate %263, %266 in 0 : vector<1x512xf32>, vector<1x512xf32> -> vector<2x512xf32>
    %268 = arith.truncf %259 : vector<2x128xf32> to vector<2x128xbf16>
    %c0_116 = arith.constant 0 : index
    %c0_117 = arith.constant 0 : index
    %269 = vector.load %arg6[%c0_116, %c0_117] : memref<128x512xbf16, #tpu.memory_space<vmem>>, vector<128x512xbf16>
    %cst_118 = arith.constant dense<0.000000e+00> : vector<2x512xf32>
    %270 = tpu.matmul %268, %269, %cst_118 {dimension_numbers = #tpu.dot_dimension_numbers<[1], [0], [0], [1], [0, 0, 1, 1], [], []>} : vector<2x128xbf16>, vector<128x512xbf16>, vector<2x512xf32> -> vector<2x512xf32>
    %271 = arith.addf %267, %270 : vector<2x512xf32>
    %272 = math.tanh %271 : vector<2x512xf32>
    %273 = vector.extract_strided_slice %272 {offsets = [0, 0], sizes = [2, 128], strides = [1, 1]} : vector<2x512xf32> to vector<2x128xf32>
    %cst_119 = arith.constant 5.000000e-01 : f32
    %274 = vector.broadcast %cst_119 : f32 to vector<2x128xf32>
    %275 = arith.mulf %274, %273 : vector<2x128xf32>
    %cst_120 = arith.constant 5.000000e-01 : f32
    %276 = vector.broadcast %cst_120 : f32 to vector<2x128xf32>
    %277 = arith.addf %275, %276 : vector<2x128xf32>
    %278 = vector.extract_strided_slice %272 {offsets = [0, 128], sizes = [2, 128], strides = [1, 1]} : vector<2x512xf32> to vector<2x128xf32>
    %cst_121 = arith.constant 5.000000e-01 : f32
    %279 = vector.broadcast %cst_121 : f32 to vector<2x128xf32>
    %280 = arith.mulf %279, %278 : vector<2x128xf32>
    %cst_122 = arith.constant 5.000000e-01 : f32
    %281 = vector.broadcast %cst_122 : f32 to vector<2x128xf32>
    %282 = arith.addf %280, %281 : vector<2x128xf32>
    %283 = vector.extract_strided_slice %272 {offsets = [0, 256], sizes = [2, 128], strides = [1, 1]} : vector<2x512xf32> to vector<2x128xf32>
    %284 = vector.extract_strided_slice %272 {offsets = [0, 384], sizes = [2, 128], strides = [1, 1]} : vector<2x512xf32> to vector<2x128xf32>
    %cst_123 = arith.constant 5.000000e-01 : f32
    %285 = vector.broadcast %cst_123 : f32 to vector<2x128xf32>
    %286 = arith.mulf %285, %284 : vector<2x128xf32>
    %cst_124 = arith.constant 5.000000e-01 : f32
    %287 = vector.broadcast %cst_124 : f32 to vector<2x128xf32>
    %288 = arith.addf %286, %287 : vector<2x128xf32>
    %289 = arith.mulf %282, %257 : vector<2x128xf32>
    %290 = arith.mulf %277, %283 : vector<2x128xf32>
    %291 = arith.addf %289, %290 : vector<2x128xf32>
    %292 = math.tanh %291 : vector<2x128xf32>
    %293 = arith.mulf %288, %292 : vector<2x128xf32>
    %294 = arith.maximumf %260, %293 : vector<2x128xf32>
    %c8_i32_125 = arith.constant 8 : i32
    %c0_126 = arith.constant 0 : index
    %c0_127 = arith.constant 0 : index
    %295 = vector.load %arg11[%c0_126, %c0_127] : memref<2x128xf32, #tpu.memory_space<vmem>>, vector<2x128xf32>
    tpu.vector_store %arg11[%c0_126, %c0_127], %293 {strides = array<i32>} : memref<2x128xf32, #tpu.memory_space<vmem>>, vector<2x128xf32>,
    %c0_128 = arith.constant 0 : index
    %c0_129 = arith.constant 0 : index
    %296 = vector.load %arg12[%c0_128, %c0_129] : memref<2x128xf32, #tpu.memory_space<vmem>>, vector<2x128xf32>
    tpu.vector_store %arg12[%c0_128, %c0_129], %291 {strides = array<i32>} : memref<2x128xf32, #tpu.memory_space<vmem>>, vector<2x128xf32>,
    %c0_130 = arith.constant 0 : index
    %c0_131 = arith.constant 0 : index
    %297 = vector.load %arg13[%c0_130, %c0_131] : memref<2x128xf32, #tpu.memory_space<vmem>>, vector<2x128xf32>
    tpu.vector_store %arg13[%c0_130, %c0_131], %294 {strides = array<i32>} : memref<2x128xf32, #tpu.memory_space<vmem>>, vector<2x128xf32>,
    %c0_i32_132 = arith.constant 0 : i32
    %298 = arith.cmpi eq, %arg1, %c0_i32_132 : i32
    %299 = arith.extui %298 : i1 to i32
    %c0_i32_133 = arith.constant 0 : i32
    %300 = arith.cmpi ne, %299, %c0_i32_133 : i32
    scf.if %300 {
      %c0_134 = arith.constant 0 : index
      %c0_135 = arith.constant 0 : index
      %301 = vector.load %arg8[%c0_134, %c0_135] : memref<128x8xf32, #tpu.memory_space<vmem>>, vector<128x8xf32>
      %cst_136 = arith.constant dense<0.000000e+00> : vector<2x8xf32>
      %302 = tpu.matmul %294, %301, %cst_136 {dimension_numbers = #tpu.dot_dimension_numbers<[1], [0], [0], [1], [0, 0, 1, 1], [], []>} : vector<2x128xf32>, vector<128x8xf32>, vector<2x8xf32> -> vector<2x8xf32>
      %c0_137 = arith.constant 0 : index
      %c0_138 = arith.constant 0 : index
      %303 = vector.load %arg9[%c0_137, %c0_138] : memref<1x8xf32, #tpu.memory_space<vmem>>, vector<1x8xf32>
      %304 = vector.broadcast %303 : vector<1x8xf32> to vector<2x8xf32>
      %305 = arith.addf %302, %304 : vector<2x8xf32>
      %cst_139 = arith.constant dense<0xFF800000> : vector<2xf32>
      %306 = vector.multi_reduction <maximumf>, %305, %cst_139 [1] : vector<2x8xf32> to vector<2xf32>
      %307 = vector.shape_cast %306 : vector<2xf32> to vector<2x1xf32>
      %308 = vector.broadcast %307 : vector<2x1xf32> to vector<2x8xf32>
      %309 = arith.subf %305, %308 : vector<2x8xf32>
      %310 = math.exp %309 : vector<2x8xf32>
      %cst_140 = arith.constant dense<0.000000e+00> : vector<2xf32>
      %311 = vector.multi_reduction <add>, %310, %cst_140 [1] : vector<2x8xf32> to vector<2xf32>
      %312 = vector.shape_cast %311 : vector<2xf32> to vector<2x1xf32>
      %313 = vector.broadcast %312 : vector<2x1xf32> to vector<2x8xf32>
      %314 = arith.divf %310, %313 : vector<2x8xf32>
      %c0_141 = arith.constant 0 : index
      %c0_142 = arith.constant 0 : index
      %315 = vector.load %arg10[%c0_141, %c0_142] : memref<2x8xf32, #tpu.memory_space<vmem>>, vector<2x8xf32>
      tpu.vector_store %arg10[%c0_141, %c0_142], %314 {strides = array<i32>} : memref<2x8xf32, #tpu.memory_space<vmem>>, vector<2x8xf32>,
    } else {
    }
    return
  }
  func.func @transform_0(%arg0: i32, %arg1: i32) -> (i32, i32, i32) {
    %c0_i32 = arith.constant 0 : i32
    %c0_i32_0 = arith.constant 0 : i32
    return %arg0, %arg1, %c0_i32 : i32, i32, i32
  }
  func.func @transform_1(%arg0: i32, %arg1: i32) -> (i32, i32) {
    %c0_i32 = arith.constant 0 : i32
    %c0_i32_0 = arith.constant 0 : i32
    %c0_i32_1 = arith.constant 0 : i32
    return %c0_i32, %c0_i32_0 : i32, i32
  }
  func.func @transform_2(%arg0: i32, %arg1: i32) -> (i32, i32) {
    %c0_i32 = arith.constant 0 : i32
    %c0_i32_0 = arith.constant 0 : i32
    %c0_i32_1 = arith.constant 0 : i32
    return %c0_i32, %c0_i32_0 : i32, i32
  }
  func.func @transform_3(%arg0: i32, %arg1: i32) -> (i32, i32) {
    %c0_i32 = arith.constant 0 : i32
    %c0_i32_0 = arith.constant 0 : i32
    %c0_i32_1 = arith.constant 0 : i32
    return %c0_i32, %c0_i32_0 : i32, i32
  }
  func.func @transform_4(%arg0: i32, %arg1: i32) -> (i32, i32) {
    %c0_i32 = arith.constant 0 : i32
    %c0_i32_0 = arith.constant 0 : i32
    %c0_i32_1 = arith.constant 0 : i32
    return %c0_i32, %c0_i32_0 : i32, i32
  }
  func.func @transform_5(%arg0: i32, %arg1: i32) -> (i32, i32) {
    %c0_i32 = arith.constant 0 : i32
    %c0_i32_0 = arith.constant 0 : i32
    %c0_i32_1 = arith.constant 0 : i32
    return %c0_i32, %c0_i32_0 : i32, i32
  }
  func.func @transform_6(%arg0: i32, %arg1: i32) -> (i32, i32) {
    %c0_i32 = arith.constant 0 : i32
    %c0_i32_0 = arith.constant 0 : i32
    %c0_i32_1 = arith.constant 0 : i32
    return %c0_i32, %c0_i32_0 : i32, i32
  }
  func.func @transform_7(%arg0: i32, %arg1: i32) -> (i32, i32) {
    %c0_i32 = arith.constant 0 : i32
    %c0_i32_0 = arith.constant 0 : i32
    %c0_i32_1 = arith.constant 0 : i32
    return %c0_i32, %c0_i32_0 : i32, i32
  }
  func.func @transform_8(%arg0: i32, %arg1: i32) -> (i32, i32) {
    %c0_i32 = arith.constant 0 : i32
    %c0_i32_0 = arith.constant 0 : i32
    return %arg0, %c0_i32 : i32, i32
  }
}

</mosaic_0001>

<bundles_post_ra>
// kernel: tpu_custom_call.1
= control target key start
LH: loop header
LB: loop body
LE: loop exit
PB: predicated region body
PF: predicated region fallthrough
CT: control target
= control target key end

     0   :  { %13 = vsyncpa [#allocation7], 0  ;;  %s3903_s0 = inlined_call_operand.vmem [shape: f32[2,8,768], index: 0, kind: input, shape index: {}]   ;;  %s3904_s1 = inlined_call_operand.hbm [shape: bf16[768,128], index: 1, kind: input, shape index: {}]   ;;  %s3905_s2 = inlined_call_operand.vmem [shape: f32[1,128], index: 2, kind: input, shape index: {}]   ;;  %s3906_s3 = inlined_call_operand.hbm [shape: bf16[128,512], index: 3, kind: input, shape index: {}]   ;;  %s3907_s4 = inlined_call_operand.hbm [shape: bf16[128,512], index: 4, kind: input, shape index: {}]   ;;  %s3908_s5 = inlined_call_operand.vmem [shape: f32[1,512], index: 5, kind: input, shape index: {}]   ;;  %s3909_s6 = inlined_call_operand.vmem [shape: f32[128,8], index: 6, kind: input, shape index: {}]   ;;  %s3910_s7 = inlined_call_operand.vmem [shape: f32[1,8], index: 7, kind: input, shape index: {}]   ;;  %s3911_s8 = inlined_call_operand.hbm [shape: f32[2,8], index: 8, kind: output, shape index: {}]  }
   0x1   :  { %14 = vsyncpa [#allocation10], 0 }
   0x2   :  { %15 = vsyncpa [#allocation8], 0  ;;  %s3146_s27 = smov [#allocation9]   ;;  %s3052_s9 = scalar_lea.hbm %s3906_s3, 4096 }
   0x3   :  { %s37_s28 = sshll.u32 %s3146_s27, 4  ;;  %p3053_p0 = scmp.ne.s32.totalorder %s3906_s3, %s3052_s9  ;;  %s38_s28 = int_to_ptr.vmem [resolvable:$true] %s37_s28 }
   0x4   :  { %p3056_p1 = scmp.lt.u32.totalorder %s3052_s9, %s3906_s3 }
   0x6   :  { %p3058_p2 = pnand %p3056_p1, %p3053_p0 }
   0x8   :  { %3061 = shalt.err (!%p3058_p2)
}
   0x9   :  { %s3062_s14 = scalar_lea.vmem %s38_s28, 4096  ;;  %p3067_p4 = scmp.lt.s32.totalorder %s38_s28, %s38_s28 }
   0xa   :  { %p3063_p3 = scmp.ne.s32.totalorder %s38_s28, %s3062_s14  ;;  %p3068_p5 = scmp.lt.s32.totalorder %s3062_s14, %s3062_s14 }
   0xc   :  { %p3069_p6 = por %p3068_p5, %p3067_p4 }
   0xe   :  { %p3070_p7 = pnand %p3069_p6, %p3063_p3 }
  0x10   :  { %3073 = shalt.err (!%p3070_p7)
}
  0x11   :  { %s3147_s15 = smov 256   ;;  %s3148_s16 = smov 16  }
  0x12   :  { %43 = dma.hbm_to_vmem [thread:$0]  %s3906_s3, 4096, %s38_s28, [#allocation10], %s3147_s15, %s3147_s15, %s3148_s16  }
  0x13   :  { %s3149_s19 = smov [#allocation6]   ;;  %s3074_s23 = scalar_lea.hbm %s3904_s1, 6144 }
  0x14   :  { %s23_s20 = sshll.u32 %s3149_s19, 4  ;;  %p3075_p8 = scmp.ne.s32.totalorder %s3904_s1, %s3074_s23  ;;  %s24_s20 = int_to_ptr.vmem [resolvable:$true] %s23_s20 }
  0x15   :  { %p3078_p9 = scmp.lt.u32.totalorder %s3074_s23, %s3904_s1 }
  0x17   :  { %p3080_p10 = pnand %p3078_p9, %p3075_p8 }
  0x19   :  { %3083 = shalt.err (!%p3080_p10)
}
  0x1a   :  { %s3084_s29 = scalar_lea.vmem %s24_s20, 6144  ;;  %p3089_p12 = scmp.lt.s32.totalorder %s24_s20, %s24_s20 }
  0x1b   :  { %p3085_p11 = scmp.ne.s32.totalorder %s24_s20, %s3084_s29  ;;  %p3090_p13 = scmp.lt.s32.totalorder %s3084_s29, %s3084_s29 }
  0x1d   :  { %p3091_p0 = por %p3090_p13, %p3089_p12 }
  0x1f   :  { %p3092_p1 = pnand %p3091_p0, %p3085_p11 }
  0x21   :  { %3095 = shalt.err (!%p3092_p1)
}
  0x22   :  { %s3150_s3 = smov 64   ;;  %s3151_s28 = smov 4  }
  0x23   :  { %29 = dma.hbm_to_vmem [thread:$0]  %s3904_s1, 6144, %s24_s20, [#allocation7], %s3150_s3, %s3150_s3, %s3151_s28  }
  0x24   :  { %s3152_s10 = smov [#allocation11]   ;;  %s3096_s14 = scalar_lea.hbm %s3907_s4, 4096 }
  0x25   :  { %s49_s11 = sshll.u32 %s3152_s10, 4  ;;  %p3097_p2 = scmp.ne.s32.totalorder %s3907_s4, %s3096_s14  ;;  %s50_s11 = int_to_ptr.vmem [resolvable:$true] %s49_s11 }
  0x26   :  { %p3100_p3 = scmp.lt.u32.totalorder %s3096_s14, %s3907_s4 }
  0x28   :  { %p3102_p4 = pnand %p3100_p3, %p3097_p2 }
  0x2a   :  { %3105 = shalt.err (!%p3102_p4)
}
  0x2b   :  { %s3106_s22 = scalar_lea.vmem %s50_s11, 4096  ;;  %p3111_p6 = scmp.lt.s32.totalorder %s50_s11, %s50_s11 }
  0x2c   :  { %p3107_p5 = scmp.ne.s32.totalorder %s50_s11, %s3106_s22  ;;  %p3112_p7 = scmp.lt.s32.totalorder %s3106_s22, %s3106_s22 }
  0x2e   :  { %p3113_p8 = por %p3112_p7, %p3111_p6 }
  0x30   :  { %p3114_p9 = pnand %p3113_p8, %p3107_p5 }
  0x32   :  { %3117 = shalt.err (!%p3114_p9)
}
  0x33   :  { %55 = dma.hbm_to_vmem [thread:$0]  %s3907_s4, 4096, %s50_s11, [#allocation10], %s3147_s15, %s3147_s15, %s3148_s16  }
  0x34   :  { %3140 = dma.done.wait [#allocation7], 6144  }
  0x35   :  { %3141 = vsyncadd [#allocation7], 4294961152 }
  0x36   :  { %3142 = dma.done.wait [#allocation10], 8192  }
  0x37   :  { %3143 = vsyncadd [#allocation10], 4294959104  ;;  %v2792_v0 = vld [vmem:[#allocation6 + $0x40] sm:$0xff]   ;;  %v2796_v4 = vld [vmem:[#allocation6 + $0x48] sm:$0xff]   ;;  %vm1012_vm0 = vcmask 1040384   ;;  %vm3157_vm1 = vmmov 0  }
  0x38   :  { %v2793_v1 = vld [vmem:[#allocation6] sm:$0xff]   ;;  %2637 = vmatprep.subr.bf16.mxu0 %v2792_v0  ;;  %v2797_v5 = vld [vmem:[#allocation6 + $0x8] sm:$0xff]   ;;  %v2800_v8 = vld [vmem:[#allocation6 + $0x50] sm:$0xff]   ;;  %vm2482_vm2 = vcmask 58368   ;;  %s3158_s25 = smov [#allocation12]  }
  0x39   :  { %v2794_v2 = vld [vmem:[#allocation6 + $0xc0] sm:$0xff]   ;;  %2638 = vmatpush3.bf16.msra.mxu0 %v2793_v1  ;;  %v2798_v6 = vld [vmem:[#allocation6 + $0xc8] sm:$0xff]   ;;  %v2801_v9 = vld [vmem:[#allocation6 + $0x10] sm:$0xff]   ;;  %s2501_s26 = sshll.u32 %s3158_s25, 4  ;;  %s2502_s26 = int_to_ptr.vmem [resolvable:$true] %s2501_s26 }
  0x3a   :  { %v2795_v3 = vld [vmem:[#allocation6 + $0x80] sm:$0xff]   ;;  %2659 = vmatprep.subr.bf16.mxu1 %v2794_v2  ;;  %2639 = vmatprep.subr.bf16.mxu0 %v2796_v4  ;;  %v2799_v7 = vld [vmem:[#allocation6 + $0x88] sm:$0xff]   ;;  %v2802_v10 = vld [vmem:[#allocation6 + $0xd0] sm:$0xff]   ;;  %p3123_p11 = scmp.lt.s32.totalorder %s2502_s26, %s2502_s26 }
  0x3b   :  { %2660 = vmatpush3.bf16.msra.mxu1 %v2795_v3  ;;  %v2803_v11 = vld [vmem:[#allocation6 + $0x90] sm:$0xff]   ;;  %v2804_v12 = vld [vmem:[#allocation6 + $0x58] sm:$0xff]   ;;  %v2808_v16 = vld [vmem:[#allocation6 + $0x60] sm:$0xff]  }
  0x3c   :  { %2661 = vmatprep.subr.bf16.mxu1 %v2798_v6  ;;  %v2805_v13 = vld [vmem:[#allocation6 + $0x18] sm:$0xff]   ;;  %v2809_v17 = vld [vmem:[#allocation6 + $0x20] sm:$0xff]   ;;  %v2812_v20 = vld [vmem:[#allocation6 + $0x68] sm:$0xff]  }
  0x3d   :  { %2640 = vmatpush3.bf16.msra.mxu0 %v2797_v5  ;;  %v2806_v14 = vld [vmem:[#allocation6 + $0xd8] sm:$0xff]   ;;  %v2810_v18 = vld [vmem:[#allocation6 + $0xe0] sm:$0xff]   ;;  %v2813_v21 = vld [vmem:[#allocation6 + $0x28] sm:$0xff]  }
  0x3e   :  { %2641 = vmatprep.subr.bf16.mxu0 %v2800_v8  ;;  %v2807_v15 = vld [vmem:[#allocation6 + $0x98] sm:$0xff]   ;;  %v2811_v19 = vld [vmem:[#allocation6 + $0xa0] sm:$0xff]   ;;  %v2814_v22 = vld [vmem:[#allocation6 + $0xe8] sm:$0xff]  }
  0x3f   :  { %2662 = vmatpush3.bf16.msra.mxu1 %v2799_v7  ;;  %v2815_v23 = vld [vmem:[#allocation6 + $0xa8] sm:$0xff]   ;;  %v2816_v24 = vld [vmem:[#allocation6 + $0x70] sm:$0xff]   ;;  %v2820_v28 = vld [vmem:[#allocation6 + $0x78] sm:$0xff]  }
  0x40   :  { %2663 = vmatprep.subr.bf16.mxu1 %v2802_v10  ;;  %v2817_v25 = vld [vmem:[#allocation6 + $0x30] sm:$0xff]   ;;  %v2821_v29 = vld [vmem:[#allocation6 + $0x38] sm:$0xff]   ;;  %v80_v31 = vld [vmem:[%s3903_s0 + $0x8] sm:$0xff] }
  0x41   :  { %2642 = vmatpush3.bf16.msra.mxu0 %v2801_v9  ;;  %v2818_v26 = vld [vmem:[#allocation6 + $0xf0] sm:$0xff]   ;;  %v2822_v30 = vld [vmem:[#allocation6 + $0xf8] sm:$0xff]   ;;  %v2824_v38 = vld [vmem:[#allocation6 + $0x140] sm:$0xff]  }
  0x42   :  { %2643 = vmatprep.subr.bf16.mxu0 %v2804_v12  ;;  %v2819_v27 = vld [vmem:[#allocation6 + $0xb0] sm:$0xff]   ;;  %v2823_v34 = vld [vmem:[#allocation6 + $0xb8] sm:$0xff]   ;;  %v88_v40 = vld [vmem:[%s3903_s0 + $0x48] sm:$0xff] }
  0x43   :  { %2664 = vmatpush3.bf16.msra.mxu1 %v2803_v11  ;;  %v86_v32 = vld [vmem:[%s3903_s0 + $0x38] sm:$0xff]  ;;  %v79_v35 = vld [vmem:[%s3903_s0] sm:$0xff]  ;;  %v85_v36 = vld [vmem:[%s3903_s0 + $0x30] sm:$0xff] }
  0x44   :  { %2665 = vmatprep.subr.bf16.mxu1 %v2806_v14  ;;  %v2632_v33 = vpack.c.bf16 %v86_v32, %v80_v31  ;;  %v2631_v37 = vpack.c.bf16 %v85_v36, %v79_v35  ;;  %v82_v39 = vld [vmem:[%s3903_s0 + $0x18] sm:$0xff]  ;;  %v2825_v42 = vld [vmem:[#allocation6 + $0x100] sm:$0xff]   ;;  %v81_v43 = vld [vmem:[%s3903_s0 + $0x10] sm:$0xff]  ;;  %v3153_v36 = vmov 0  }
  0x45   :  { %2644 = vmatpush3.bf16.msra.mxu0 %v2805_v13  ;;  %v2634_v41 = vpack.c.bf16 %v88_v40, %v82_v39  ;;  %v87_v44 = vld [vmem:[%s3903_s0 + $0x40] sm:$0xff]  ;;  %v2826_v46 = vld [vmem:[#allocation6 + $0x148] sm:$0xff]   ;;  %v2828_v48 = vld [vmem:[#allocation6 + $0x150] sm:$0xff]  }
  0x46   :  { %2645 = vmatprep.subr.bf16.mxu0 %v2808_v16  ;;  %562 = vmatprep.mubr.bf16.mxu0 %v2632_v33  ;;  %v2633_v45 = vpack.c.bf16 %v87_v44, %v81_v43  ;;  %v2827_v47 = vld [vmem:[#allocation6 + $0x108] sm:$0xff]   ;;  %v2829_v49 = vld [vmem:[#allocation6 + $0x110] sm:$0xff]   ;;  %v2830_v50 = vld [vmem:[#allocation6 + $0x158] sm:$0xff]  }
  0x47   :  { %2666 = vmatpush3.bf16.msra.mxu1 %v2807_v15  ;;  %603 = vmatprep.mubr.bf16.mxu1 %v2634_v41  ;;  %v2831_v51 = vld [vmem:[#allocation6 + $0x118] sm:$0xff]   ;;  %v2832_v52 = vld [vmem:[#allocation6 + $0x160] sm:$0xff]   ;;  %v2834_v54 = vld [vmem:[#allocation6 + $0x168] sm:$0xff]  }
  0x48   :  { %2667 = vmatprep.subr.bf16.mxu1 %v2810_v18  ;;  %v2833_v53 = vld [vmem:[#allocation6 + $0x120] sm:$0xff]   ;;  %v2835_v56 = vld [vmem:[#allocation6 + $0x128] sm:$0xff]   ;;  %v90_v57 = vld [vmem:[%s3903_s0 + $0x58] sm:$0xff] }
  0x49   :  { %2646 = vmatpush3.bf16.msra.mxu0 %v2809_v17  ;;  %v84_v55 = vld [vmem:[%s3903_s0 + $0x28] sm:$0xff]  ;;  %v2836_v58 = vld [vmem:[#allocation6 + $0x170] sm:$0xff]   ;;  %v2838_v61 = vld [vmem:[#allocation6 + $0x178] sm:$0xff]  }
  0x4a   :  { %2647 = vmatprep.subr.bf16.mxu0 %v2812_v20  ;;  %v2636_v59 = vpack.c.bf16 %v90_v57, %v84_v55  ;;  %v2837_v60 = vld [vmem:[#allocation6 + $0x130] sm:$0xff]   ;;  %v2839_v62 = vld [vmem:[#allocation6 + $0x138] sm:$0xff]  }
  0x4b   :  { %2668 = vmatpush3.bf16.msra.mxu1 %v2811_v19  ;;  %v83_v63 = vld [vmem:[%s3903_s0 + $0x20] sm:$0xff]  ;;  %v89_v0 = vld [vmem:[%s3903_s0 + $0x50] sm:$0xff]  ;;  %v2842_v3 = vld [vmem:[#allocation9 + $0x4] ss:$16 sps:$4 sm:$0xff]  }
  0x4c   :  { %2669 = vmatprep.subr.bf16.mxu1 %v2814_v22  ;;  %v2635_v1 = vpack.c.bf16 %v89_v0, %v83_v63  ;;  %v2840_v2 = vld [vmem:[#allocation9] ss:$16 sps:$4 sm:$0xff]   ;;  %v2843_v4 = vld [vmem:[#allocation9 + $0x8] ss:$16 sps:$4 sm:$0xff]   ;;  %v2845_v5 = vld [vmem:[#allocation9 + $0xc] ss:$16 sps:$4 sm:$0xff]  }
  0x4d   :  { %2648 = vmatpush3.bf16.msra.mxu0 %v2813_v21  ;;  %v2848_v6 = vld [vmem:[#allocation9 + $0x24] ss:$16 sps:$4 sm:$0xff]   ;;  %v2851_v7 = vld [vmem:[#allocation9 + $0x2c] ss:$16 sps:$4 sm:$0xff]   ;;  %v2846_v8 = vld [vmem:[#allocation9 + $0x20] ss:$16 sps:$4 sm:$0xff]  }
  0x4e   :  { %2649 = vmatprep.subr.bf16.mxu0 %v2816_v24  ;;  %v2849_v9 = vld [vmem:[#allocation9 + $0x28] ss:$16 sps:$4 sm:$0xff]   ;;  %v2854_v10 = vld [vmem:[#allocation9 + $0x44] ss:$16 sps:$4 sm:$0xff]   ;;  %v2857_v11 = vld [vmem:[#allocation9 + $0x4c] ss:$16 sps:$4 sm:$0xff]  }
  0x4f   :  { %2670 = vmatpush3.bf16.msra.mxu1 %v2815_v23  ;;  %v2852_v12 = vld [vmem:[#allocation9 + $0x40] ss:$16 sps:$4 sm:$0xff]   ;;  %v2855_v13 = vld [vmem:[#allocation9 + $0x48] ss:$16 sps:$4 sm:$0xff]   ;;  %v2860_v14 = vld [vmem:[#allocation9 + $0x64] ss:$16 sps:$4 sm:$0xff]  }
  0x50   :  { %2671 = vmatprep.subr.bf16.mxu1 %v2818_v26  ;;  %v2863_v15 = vld [vmem:[#allocation9 + $0x6c] ss:$16 sps:$4 sm:$0xff]   ;;  %v2858_v16 = vld [vmem:[#allocation9 + $0x60] ss:$16 sps:$4 sm:$0xff]   ;;  %v2861_v17 = vld [vmem:[#allocation9 + $0x68] ss:$16 sps:$4 sm:$0xff]  }
  0x51   :  { %2650 = vmatpush3.bf16.msra.mxu0 %v2817_v25  ;;  %v2866_v18 = vld [vmem:[#allocation9 + $0x84] ss:$16 sps:$4 sm:$0xff]   ;;  %v2869_v19 = vld [vmem:[#allocation9 + $0x8c] ss:$16 sps:$4 sm:$0xff]   ;;  %v2864_v20 = vld [vmem:[#allocation9 + $0x80] ss:$16 sps:$4 sm:$0xff]  }
  0x52   :  { %2651 = vmatprep.subr.bf16.mxu0 %v2820_v28  ;;  %v2867_v21 = vld [vmem:[#allocation9 + $0x88] ss:$16 sps:$4 sm:$0xff]   ;;  %v2872_v22 = vld [vmem:[#allocation9 + $0xa4] ss:$16 sps:$4 sm:$0xff]   ;;  %v2875_v23 = vld [vmem:[#allocation9 + $0xac] ss:$16 sps:$4 sm:$0xff]  }
  0x53   :  { %2672 = vmatpush3.bf16.msra.mxu1 %v2819_v27  ;;  %v2870_v24 = vld [vmem:[#allocation9 + $0xa0] ss:$16 sps:$4 sm:$0xff]   ;;  %v2873_v25 = vld [vmem:[#allocation9 + $0xa8] ss:$16 sps:$4 sm:$0xff]   ;;  %v2878_v26 = vld [vmem:[#allocation9 + $0xc4] ss:$16 sps:$4 sm:$0xff]  }
  0x54   :  { %2673 = vmatprep.subr.bf16.mxu1 %v2822_v30  ;;  %v2881_v27 = vld [vmem:[#allocation9 + $0xcc] ss:$16 sps:$4 sm:$0xff]   ;;  %v2876_v28 = vld [vmem:[#allocation9 + $0xc0] ss:$16 sps:$4 sm:$0xff]   ;;  %v2884_v30 = vld [vmem:[#allocation9 + $0xe4] ss:$16 sps:$4 sm:$0xff]  }
  0x55   :  { %2652 = vmatpush3.bf16.msra.mxu0 %v2821_v29  ;;  %v2879_v29 = vld [vmem:[#allocation9 + $0xc8] ss:$16 sps:$4 sm:$0xff]   ;;  %v2887_v31 = vld [vmem:[#allocation9 + $0xec] ss:$16 sps:$4 sm:$0xff]   ;;  %v2882_v32 = vld [vmem:[#allocation9 + $0xe0] ss:$16 sps:$4 sm:$0xff]  }
  0x56   :  { %2681 = vmatprep.subr.bf16.mxu0 %v2824_v38  ;;  %v2885_v33 = vld [vmem:[#allocation9 + $0xe8] ss:$16 sps:$4 sm:$0xff]   ;;  %v3284_v35 = vld [vmem:[#allocation11 + $0xc] ss:$16 sps:$4 sm:$0xff]  }
  0x57   :  { %2674 = vmatpush3.bf16.msra.mxu1 %v2823_v34  ;;  %v3282_v34 = vld [vmem:[#allocation11 + $0x4] ss:$16 sps:$4 sm:$0xff]   ;;  %v2511_v39 = vld [vmem:[%s3905_s2] ss:$0 sm:$0xff] }
  0x58   :  { %563 = vmatmul.mubr.bf16.vlgmr.msra.gmra.mrb[0].mxu0 %v2631_v37  ;;  %870 = vmatprep.subr.bf16.mxu1 %v2842_v3  ;;  %v3154_v37 = vmov 0.0  }
  0x59   :  { %2682 = vmatpush3.bf16.msra.mxu0 %v2825_v42  ;;  %644 = vmatprep.mubr.bf16.mxu0 %v2636_v59  ;;  %76 = vst [vmem:[#allocation2] sm:$0x3] %v3154_v37  ;;  %77 = vst [vmem:[#allocation3] sm:$0x3] %v3154_v37 }
  0x5a   :  { %604 = vmatmul.mubr.bf16.vlgmr.msra.gmra.mrb[0].mxu1 %v2633_v45  ;;  %2683 = vmatprep.subr.bf16.mxu0 %v2826_v46 }
  0x5b   :  { %871 = vmatpush1.bf16.msra.mxu1 %v2840_v2  ;;  %902 = vmatprep.mubr.bf16.mxu1 %v3153_v36  ;;  %v3297_v2 = vld [vmem:[#allocation11 + $0x8] ss:$16 sps:$4 sm:$0xff]  }
  0x5c   :  { %872 = vmatprep.subr.bf16.mxu1 %v2848_v6  ;;  %v3305_v6 = vld [vmem:[#allocation11 + $0x20] ss:$16 sps:$4 sm:$0xff]  }
  0x5d   :  { %2684 = vmatpush3.bf16.msra.mxu0 %v2827_v47 }
  0x5e   :  { %2685 = vmatprep.subr.bf16.mxu0 %v2828_v48 }
  0x5f   :  { %873 = vmatpush1.bf16.msra.mxu1 %v2846_v8  ;;  %v3311_v8 = vld [vmem:[#allocation11 + $0x44] ss:$16 sps:$4 sm:$0xff]  }
  0x60   :  { %874 = vmatprep.subr.bf16.mxu1 %v2854_v10  ;;  %v3319_v10 = vld [vmem:[#allocation11 + $0x40] ss:$16 sps:$4 sm:$0xff]  }
  0x61   :  { %2686 = vmatpush3.bf16.msra.mxu0 %v2829_v49 }
  0x62   :  { %2687 = vmatprep.subr.bf16.mxu0 %v2830_v50 }
  0x63   :  { %875 = vmatpush1.bf16.msra.mxu1 %v2852_v12  ;;  %v3325_v12 = vld [vmem:[#allocation11 + $0x64] ss:$16 sps:$4 sm:$0xff]  }
  0x64   :  { %876 = vmatprep.subr.bf16.mxu1 %v2860_v14  ;;  %v3331_v14 = vld [vmem:[#allocation11 + $0x60] ss:$16 sps:$4 sm:$0xff]  }
  0x65   :  { %2688 = vmatpush3.bf16.msra.mxu0 %v2831_v51 }
  0x66   :  { %2689 = vmatprep.subr.bf16.mxu0 %v2832_v52 }
  0x67   :  { %877 = vmatpush1.bf16.msra.mxu1 %v2858_v16  ;;  %v3337_v16 = vld [vmem:[#allocation11 + $0x84] ss:$16 sps:$4 sm:$0xff]  }
  0x68   :  { %878 = vmatprep.subr.bf16.mxu1 %v2866_v18  ;;  %v3343_v18 = vld [vmem:[#allocation11 + $0x80] ss:$16 sps:$4 sm:$0xff]  }
  0x69   :  { %2690 = vmatpush3.bf16.msra.mxu0 %v2833_v53 }
  0x6a   :  { %2691 = vmatprep.subr.bf16.mxu0 %v2834_v54 }
  0x6b   :  { %879 = vmatpush1.bf16.msra.mxu1 %v2864_v20  ;;  %v3349_v20 = vld [vmem:[#allocation11 + $0xa4] ss:$16 sps:$4 sm:$0xff]  }
  0x6c   :  { %880 = vmatprep.subr.bf16.mxu1 %v2872_v22  ;;  %v3355_v22 = vld [vmem:[#allocation11 + $0xa0] ss:$16 sps:$4 sm:$0xff]  }
  0x6d   :  { %2692 = vmatpush3.bf16.msra.mxu0 %v2835_v56 }
  0x6e   :  { %2693 = vmatprep.subr.bf16.mxu0 %v2836_v58 }
  0x6f   :  { %881 = vmatpush1.bf16.msra.mxu1 %v2870_v24  ;;  %v3361_v24 = vld [vmem:[#allocation11 + $0xc4] ss:$16 sps:$4 sm:$0xff]  }
  0x70   :  { %882 = vmatprep.subr.bf16.mxu1 %v2878_v26  ;;  %v3367_v26 = vld [vmem:[#allocation11 + $0xc0] ss:$16 sps:$4 sm:$0xff]  }
  0x71   :  { %2694 = vmatpush3.bf16.msra.mxu0 %v2837_v60 }
  0x72   :  { %2695 = vmatprep.subr.bf16.mxu0 %v2838_v61 }
  0x73   :  { %883 = vmatpush1.bf16.msra.mxu1 %v2876_v28  ;;  %v3373_v28 = vld [vmem:[#allocation11 + $0xe4] ss:$16 sps:$4 sm:$0xff]  }
  0x74   :  { %884 = vmatprep.subr.bf16.mxu1 %v2884_v30  ;;  %v3379_v30 = vld [vmem:[#allocation11 + $0xe0] ss:$16 sps:$4 sm:$0xff]  }
  0x75   :  { %2696 = vmatpush3.bf16.msra.mxu0 %v2839_v62 }
  0x76   :  { %913 = vmatprep.subr.bf16.mxu0 %v2845_v5  ;;  %v3301_v5 = vld [vmem:[#allocation11 + $0x2c] ss:$16 sps:$4 sm:$0xff]  }
  0x77   :  { %885 = vmatpush1.bf16.msra.mxu1 %v2882_v32  ;;  %v964_v32 = vld [vmem:[#allocation2] sm:$0x3] }
  0x78   :  { %645 = vmatmul.mubr.bf16.vlgmr.msra.gmra.mrb[4].mxu0 %v2635_v1  ;;  %1210 = vmatprep.subr.bf16.mxu1 %v3282_v34  ;;  %v3295_v1 = vld [vmem:[#allocation11] ss:$16 sps:$4 sm:$0xff]  }
  0x79   :  { %914 = vmatpush1.bf16.msra.mxu0 %v2843_v4  ;;  %945 = vmatprep.mubr.bf16.mxu0 %v3153_v36  ;;  %v3299_v4 = vld [vmem:[#allocation11 + $0x24] ss:$16 sps:$4 sm:$0xff]  }
  0x7a   :  { %915 = vmatprep.subr.bf16.mxu0 %v2851_v7  ;;  %v3307_v7 = vld [vmem:[#allocation11 + $0x28] ss:$16 sps:$4 sm:$0xff]  }
  0x7d   :  { %916 = vmatpush1.bf16.msra.mxu0 %v2849_v9  ;;  %v3313_v9 = vld [vmem:[#allocation11 + $0x4c] ss:$16 sps:$4 sm:$0xff]  }
  0x7e   :  { %917 = vmatprep.subr.bf16.mxu0 %v2857_v11  ;;  %v3321_v11 = vld [vmem:[#allocation11 + $0x48] ss:$16 sps:$4 sm:$0xff]  }
  0x81   :  { %918 = vmatpush1.bf16.msra.mxu0 %v2855_v13  ;;  %v3327_v13 = vld [vmem:[#allocation11 + $0x6c] ss:$16 sps:$4 sm:$0xff]  }
  0x82   :  { %919 = vmatprep.subr.bf16.mxu0 %v2863_v15  ;;  %v3333_v15 = vld [vmem:[#allocation11 + $0x68] ss:$16 sps:$4 sm:$0xff]  }
  0x85   :  { %920 = vmatpush1.bf16.msra.mxu0 %v2861_v17  ;;  %v3339_v17 = vld [vmem:[#allocation11 + $0x8c] ss:$16 sps:$4 sm:$0xff]  }
  0x86   :  { %921 = vmatprep.subr.bf16.mxu0 %v2869_v19  ;;  %v3345_v19 = vld [vmem:[#allocation11 + $0x88] ss:$16 sps:$4 sm:$0xff]  }
  0x89   :  { %922 = vmatpush1.bf16.msra.mxu0 %v2867_v21  ;;  %v3351_v21 = vld [vmem:[#allocation11 + $0xac] ss:$16 sps:$4 sm:$0xff]  }
  0x8a   :  { %923 = vmatprep.subr.bf16.mxu0 %v2875_v23  ;;  %v3357_v23 = vld [vmem:[#allocation11 + $0xa8] ss:$16 sps:$4 sm:$0xff]  }
  0x8d   :  { %924 = vmatpush1.bf16.msra.mxu0 %v2873_v25  ;;  %v3363_v25 = vld [vmem:[#allocation11 + $0xcc] ss:$16 sps:$4 sm:$0xff]  }
  0x8e   :  { %925 = vmatprep.subr.bf16.mxu0 %v2881_v27  ;;  %v3369_v27 = vld [vmem:[#allocation11 + $0xc8] ss:$16 sps:$4 sm:$0xff]  }
  0x91   :  { %926 = vmatpush1.bf16.msra.mxu0 %v2879_v29  ;;  %v3375_v29 = vld [vmem:[#allocation11 + $0xec] ss:$16 sps:$4 sm:$0xff]  }
  0x92   :  { %927 = vmatprep.subr.bf16.mxu0 %v2887_v31  ;;  %v3381_v31 = vld [vmem:[#allocation11 + $0xe8] ss:$16 sps:$4 sm:$0xff]  }
  0x95   :  { %928 = vmatpush1.bf16.msra.mxu0 %v2885_v33  ;;  %v1017_v33 = vpack.c.bf16 %v964_v32, %v964_v32 }
  0x96   :  { %1251 = vmatprep.subr.bf16.mxu0 %v3284_v35 }
 0x12b   :  { %v2653_v38 = vpop.f32.mrb[0].mxu0 }
 0x12c   :  { %v2654_v40 = vpop.f32.mrb[1].mxu0 }
 0x12d   :  { %v2655_v41 = vadd.f32 %v2654_v40, %v2653_v38  ;;  %v2656_v42 = vpop.f32.mrb[2].mxu0  ;;  %v2675_v43 = vpop.f32.mrb[0].mxu1  ;;  %v3155_v38 = vmov -inf  }
 0x12e   :  { %v2657_v44 = vpop.f32.mrb[3].mxu0  ;;  %v2676_v47 = vpop.f32.mrb[1].mxu1  ;;  %78 = vst [vmem:[#allocation4] sm:$0x3] %v3155_v38 }
 0x12f   :  { %v565_v45 = vadd.f32 %v2655_v41, %v2511_v39  ;;  %v2658_v46 = vadd.f32 %v2657_v44, %v2656_v42  ;;  %v2677_v48 = vadd.f32 %v2676_v47, %v2675_v43  ;;  %v2678_v49 = vpop.f32.mrb[2].mxu1  ;;  %v688_v43 = vld [vmem:[%s3908_s5] sm:$0xf] }
 0x130   :  { %v2679_v51 = vpop.f32.mrb[3].mxu1 }
 0x131   :  { %v568_v50 = vadd.f32 %v2658_v46, %v2511_v39  ;;  %v606_v52 = vadd.f32 %v2677_v48, %v565_v45  ;;  %v2680_v53 = vadd.f32 %v2679_v51, %v2678_v49  ;;  %v690_v39 = vlaneseq }
 0x133   :  { %v609_v54 = vadd.f32 %v2680_v53, %v568_v50  ;;  %v691_v40 = vshrl.u32 %v690_v39, 7 }
 0x135   :  { %v3423_v41 = vsub.s32 0, %v691_v40  ;;  %v3425_v42 = vsub.s32 2, %v691_v40  ;;  %v3430_v44 = vsub.s32 1, %v691_v40  ;;  %v3432_v45 = vsub.s32 3, %v691_v40 }
 0x137   :  { %v693_v46 = vrot.slane %v688_v43, %v3423_v41  ;;  %v701_v47 = vrot.slane %v688_v43, %v3425_v42  ;;  %v697_v48 = vrot.slane %v688_v43, %v3430_v44  ;;  %v705_v49 = vrot.slane %v688_v43, %v3432_v45 }
 0x14b   :  { %v2697_v55 = vpop.f32.mrb[4].mxu0 }
 0x14c   :  { %v2698_v56 = vpop.f32.mrb[5].mxu0 }
 0x14d   :  { %v2699_v57 = vadd.f32 %v2698_v56, %v2697_v55  ;;  %v2700_v58 = vpop.f32.mrb[6].mxu0 }
 0x14e   :  { %v2701_v59 = vpop.f32.mrb[7].mxu0 }
 0x14f   :  { %v647_v60 = vadd.f32 %v2699_v57, %v606_v52  ;;  %v2702_v61 = vadd.f32 %v2701_v59, %v2700_v58 }
 0x151   :  { %v650_v62 = vadd.f32 %v2702_v61, %v609_v54  ;;  %v653_v63 = vmax.f32 %v647_v60, 0.0 }
 0x153   :  { %v654_v0 = vmax.f32 %v650_v62, 0.0 }
 0x155   :  { %v655_v3 = vpack.c.bf16 %v654_v0, %v653_v63 }
 0x157   :  { %903 = vmatmul.mubr.bf16.vlgmr.msra.gmra.mrb[4].mxu1 %v655_v3  ;;  %946 = vmatmul.mubr.bf16.vlgmr.msra.gmra.mrb[8].mxu0 %v655_v3 }
 0x158   :  { %1211 = vmatpush1.bf16.msra.mxu1 %v3295_v1  ;;  %1252 = vmatpush1.bf16.msra.mxu0 %v3297_v2 }
 0x159   :  { %1212 = vmatprep.subr.bf16.mxu1 %v3299_v4  ;;  %1253 = vmatprep.subr.bf16.mxu0 %v3301_v5 }
 0x15a   :  { %1242 = vmatprep.mubr.bf16.mxu1 %v3153_v36  ;;  %1283 = vmatprep.mubr.bf16.mxu0 %v3153_v36 }
 0x15c   :  { %1213 = vmatpush1.bf16.msra.mxu1 %v3305_v6  ;;  %1254 = vmatpush1.bf16.msra.mxu0 %v3307_v7 }
 0x15d   :  { %1214 = vmatprep.subr.bf16.mxu1 %v3311_v8  ;;  %1255 = vmatprep.subr.bf16.mxu0 %v3313_v9 }
 0x160   :  { %1215 = vmatpush1.bf16.msra.mxu1 %v3319_v10  ;;  %1256 = vmatpush1.bf16.msra.mxu0 %v3321_v11 }
 0x161   :  { %1216 = vmatprep.subr.bf16.mxu1 %v3325_v12  ;;  %1257 = vmatprep.subr.bf16.mxu0 %v3327_v13 }
 0x164   :  { %1217 = vmatpush1.bf16.msra.mxu1 %v3331_v14  ;;  %1258 = vmatpush1.bf16.msra.mxu0 %v3333_v15 }
 0x165   :  { %1218 = vmatprep.subr.bf16.mxu1 %v3337_v16  ;;  %1259 = vmatprep.subr.bf16.mxu0 %v3339_v17 }
 0x168   :  { %1219 = vmatpush1.bf16.msra.mxu1 %v3343_v18  ;;  %1260 = vmatpush1.bf16.msra.mxu0 %v3345_v19 }
 0x169   :  { %1220 = vmatprep.subr.bf16.mxu1 %v3349_v20  ;;  %1261 = vmatprep.subr.bf16.mxu0 %v3351_v21 }
 0x16c   :  { %1221 = vmatpush1.bf16.msra.mxu1 %v3355_v22  ;;  %1262 = vmatpush1.bf16.msra.mxu0 %v3357_v23 }
 0x16d   :  { %1222 = vmatprep.subr.bf16.mxu1 %v3361_v24  ;;  %1263 = vmatprep.subr.bf16.mxu0 %v3363_v25 }
 0x170   :  { %1223 = vmatpush1.bf16.msra.mxu1 %v3367_v26  ;;  %1264 = vmatpush1.bf16.msra.mxu0 %v3369_v27 }
 0x171   :  { %1224 = vmatprep.subr.bf16.mxu1 %v3373_v28  ;;  %1265 = vmatprep.subr.bf16.mxu0 %v3375_v29 }
 0x174   :  { %1225 = vmatpush1.bf16.msra.mxu1 %v3379_v30  ;;  %1266 = vmatpush1.bf16.msra.mxu0 %v3381_v31 }
 0x175   :  { %1363 = vmatprep.subr.bf16.mxu1 %v3282_v34  ;;  %1404 = vmatprep.subr.bf16.mxu0 %v3284_v35 }
 0x177   :  { %1243 = vmatmul.mubr.bf16.vlgmr.msra.gmra.mrb[8].mxu1 %v1017_v33  ;;  %1284 = vmatmul.mubr.bf16.vlgmr.msra.gmra.mrb[12].mxu0 %v1017_v33 }
 0x178   :  { %1364 = vmatpush1.bf16.msra.mxu1 %v3295_v1  ;;  %1405 = vmatpush1.bf16.msra.mxu0 %v3297_v2 }
 0x179   :  { %1365 = vmatprep.subr.bf16.mxu1 %v3299_v4  ;;  %1406 = vmatprep.subr.bf16.mxu0 %v3301_v5 }
 0x17a   :  { %1395 = vmatprep.mubr.bf16.mxu1 %v3153_v36  ;;  %1436 = vmatprep.mubr.bf16.mxu0 %v3153_v36 }
 0x17c   :  { %1366 = vmatpush1.bf16.msra.mxu1 %v3305_v6  ;;  %1407 = vmatpush1.bf16.msra.mxu0 %v3307_v7 }
 0x17d   :  { %1367 = vmatprep.subr.bf16.mxu1 %v3311_v8  ;;  %1408 = vmatprep.subr.bf16.mxu0 %v3313_v9 }
 0x180   :  { %1368 = vmatpush1.bf16.msra.mxu1 %v3319_v10  ;;  %1409 = vmatpush1.bf16.msra.mxu0 %v3321_v11 }
 0x181   :  { %1369 = vmatprep.subr.bf16.mxu1 %v3325_v12  ;;  %1410 = vmatprep.subr.bf16.mxu0 %v3327_v13 }
 0x184   :  { %1370 = vmatpush1.bf16.msra.mxu1 %v3331_v14  ;;  %1411 = vmatpush1.bf16.msra.mxu0 %v3333_v15 }
 0x185   :  { %1371 = vmatprep.subr.bf16.mxu1 %v3337_v16  ;;  %1412 = vmatprep.subr.bf16.mxu0 %v3339_v17 }
 0x188   :  { %1372 = vmatpush1.bf16.msra.mxu1 %v3343_v18  ;;  %1413 = vmatpush1.bf16.msra.mxu0 %v3345_v19 }
 0x189   :  { %1373 = vmatprep.subr.bf16.mxu1 %v3349_v20  ;;  %1414 = vmatprep.subr.bf16.mxu0 %v3351_v21 }
 0x18c   :  { %1374 = vmatpush1.bf16.msra.mxu1 %v3355_v22  ;;  %1415 = vmatpush1.bf16.msra.mxu0 %v3357_v23 }
 0x18d   :  { %1375 = vmatprep.subr.bf16.mxu1 %v3361_v24  ;;  %1416 = vmatprep.subr.bf16.mxu0 %v3363_v25 }
 0x190   :  { %1376 = vmatpush1.bf16.msra.mxu1 %v3367_v26  ;;  %1417 = vmatpush1.bf16.msra.mxu0 %v3369_v27 }
 0x191   :  { %1377 = vmatprep.subr.bf16.mxu1 %v3373_v28  ;;  %1418 = vmatprep.subr.bf16.mxu0 %v3375_v29 }
 0x194   :  { %1378 = vmatpush1.bf16.msra.mxu1 %v3379_v30  ;;  %1419 = vmatpush1.bf16.msra.mxu0 %v3381_v31 }
 0x195   :  { %1516 = vmatprep.subr.bf16.mxu1 %v3282_v34  ;;  %1557 = vmatprep.subr.bf16.mxu0 %v3284_v35 }
 0x22a   :  { %v904_v50 = vpop.f32.mrb[4].mxu1  ;;  %v947_v51 = vpop.f32.mrb[8].mxu0 }
 0x22b   :  { %v905_v52 = vadd.f32 %v904_v50, %v693_v46  ;;  %v948_v53 = vadd.f32 %v947_v51, %v701_v47  ;;  %v906_v54 = vpop.f32.mrb[5].mxu1  ;;  %v949_v55 = vpop.f32.mrb[9].mxu0 }
 0x22c   :  { %v907_v56 = vadd.f32 %v906_v54, %v697_v48  ;;  %v950_v57 = vadd.f32 %v949_v55, %v705_v49  ;;  %v908_v58 = vpop.f32.mrb[6].mxu1  ;;  %v951_v59 = vpop.f32.mrb[10].mxu0 }
 0x22d   :  { %956 = vst [vmem:[#allocation5] sm:$0xff] %v905_v52  ;;  %958 = vst [vmem:[#allocation5 + $0x10] sm:$0xff] %v948_v53  ;;  %v909_v60 = vadd.f32 %v908_v58, %v693_v46  ;;  %v952_v61 = vadd.f32 %v951_v59, %v701_v47  ;;  %v910_v62 = vpop.f32.mrb[7].mxu1  ;;  %v953_v63 = vpop.f32.mrb[11].mxu0 }
 0x22e   :  { %957 = vst [vmem:[#allocation5 + $0x8] sm:$0xff] %v907_v56  ;;  %959 = vst [vmem:[#allocation5 + $0x18] sm:$0xff] %v950_v57  ;;  %v911_v0 = vadd.f32 %v910_v62, %v697_v48  ;;  %v954_v3 = vadd.f32 %v953_v63, %v705_v49 }
 0x22f   :  { %960 = vst [vmem:[#allocation5 + $0x20] sm:$0xff] %v909_v60  ;;  %962 = vst [vmem:[#allocation5 + $0x30] sm:$0xff] %v952_v61 }
 0x230   :  { %961 = vst [vmem:[#allocation5 + $0x28] sm:$0xff] %v911_v0  ;;  %963 = vst [vmem:[#allocation5 + $0x38] sm:$0xff] %v954_v3 }
 0x235   :  { %v967_v33 = vld [vmem:[#allocation5] ss:$8 sm:$0xf] }
 0x236   :  { %v974_v40 = vrot.slane %v967_v33, %v3423_v41  ;;  %v978_v46 = vrot.slane %v967_v33, %v3430_v44  ;;  %v982_v49 = vrot.slane %v967_v33, %v3425_v42  ;;  %v986_v63 = vrot.slane %v967_v33, %v3432_v45 }
 0x237   :  { %v969_v32 = vld [vmem:[#allocation5 + $0x20] ss:$8 sm:$0xf] }
 0x238   :  { %v995_v38 = vrot.slane %v969_v32, %v3423_v41  ;;  %v999_v39 = vrot.slane %v969_v32, %v3430_v44  ;;  %v1003_v43 = vrot.slane %v969_v32, %v3425_v42  ;;  %v1007_v62 = vrot.slane %v969_v32, %v3432_v45 }
 0x23a   :  { %v1013_v47 = vsel %vm1012_vm0, %v974_v40, %v995_v38  ;;  %v1014_v52 = vsel %vm1012_vm0, %v978_v46, %v999_v39  ;;  %v1015_v55 = vsel %vm1012_vm0, %v982_v49, %v1003_v43  ;;  %v1016_v0 = vsel %vm1012_vm0, %v986_v63, %v1007_v62 }
 0x24a   :  { %v1244_v48 = vpop.f32.mrb[8].mxu1  ;;  %v1285_v50 = vpop.f32.mrb[12].mxu0 }
 0x24b   :  { %v1292_v51 = vadd.f32 %v1244_v48, %v1013_v47  ;;  %v1246_v53 = vpop.f32.mrb[9].mxu1  ;;  %v1287_v54 = vpop.f32.mrb[13].mxu0  ;;  %v1294_v59 = vadd.f32 %v1285_v50, %v1015_v55  ;;  %v965_v48 = vld [vmem:[#allocation3] sm:$0x3] }
 0x24c   :  { %v1293_v56 = vadd.f32 %v1246_v53, %v1014_v52  ;;  %v1248_v57 = vpop.f32.mrb[10].mxu1  ;;  %v1289_v58 = vpop.f32.mrb[14].mxu0  ;;  %v1295_v3 = vadd.f32 %v1287_v54, %v1016_v0 }
 0x24d   :  { %2936 = vtanh.f32 %v1292_v51  ;;  %v1249_v60 = vpop.f32.mrb[11].mxu1  ;;  %v1290_v61 = vpop.f32.mrb[15].mxu0  ;;  %v1315_v57 = vld [vmem:[#allocation5 + $0x21] ss:$8 sm:$0xf] }
 0x24e   :  { %2938 = vtanh.f32 %v1293_v56  ;;  %v1313_v58 = vld [vmem:[#allocation5 + $0x1] ss:$8 sm:$0xf]  ;;  %v1349_v60 = vrot.slane %v1315_v57, %v3425_v42  ;;  %v1345_v61 = vrot.slane %v1315_v57, %v3430_v44  ;;  %v1353_v62 = vrot.slane %v1315_v57, %v3432_v45 }
 0x24f   :  { %2940 = vtanh.f32 %v1294_v59  ;;  %v1341_v59 = vrot.slane %v1315_v57, %v3423_v41  ;;  %v1320_v63 = vrot.slane %v1313_v58, %v3423_v41  ;;  %v1328_v0 = vrot.slane %v1313_v58, %v3425_v42 }
 0x250   :  { %2942 = vtanh.f32 %v1295_v3  ;;  %v1324_v3 = vrot.slane %v1313_v58, %v3430_v44 }
 0x257   :  { %v2937_v38 = vpop.eup %2936 }
 0x258   :  { %v1300_v39 = vmul.f32 0.5, %v2937_v38  ;;  %v2939_v40 = vpop.eup %2938  ;;  %v1332_v38 = vrot.slane %v1313_v58, %v3432_v45 }
 0x259   :  { %v1302_v46 = vmul.f32 0.5, %v2939_v40  ;;  %v2941_v47 = vpop.eup %2940 }
 0x25a   :  { %v1301_v43 = vadd.f32 0.5, %v1300_v39  ;;  %v2943_v32 = vpop.eup %2942  ;;  %v1358_v39 = vsel %vm1012_vm0, %v1320_v63, %v1341_v59 }
 0x25b   :  { %v1303_v49 = vadd.f32 0.5, %v1302_v46  ;;  %v1304_v33 = vmul.f32 0.5, %v2943_v32 }
 0x25c   :  { %v1307_v50 = vmul.f32 %v2941_v47, %v1301_v43  ;;  %v1360_v43 = vsel %vm1012_vm0, %v1328_v0, %v1349_v60 }
 0x25d   :  { %v1306_v51 = vmul.f32 %v1303_v49, %v965_v48  ;;  %v1305_v53 = vadd.f32 0.5, %v1304_v33  ;;  %v1359_v49 = vsel %vm1012_vm0, %v1324_v3, %v1345_v61 }
 0x25f   :  { %v3450_v52 = vadd.f32 %v1307_v50, %v1306_v51  ;;  %v1361_v51 = vsel %vm1012_vm0, %v1332_v38, %v1353_v62 }
 0x261   :  { %2944 = vtanh.f32 %v3450_v52 }
 0x26b   :  { %v2945_v55 = vpop.eup %2944 }
 0x26c   :  { %v3453_v54 = vmul.f32 %v2945_v55, %v1305_v53 }
 0x26e   :  { %v1362_v56 = vpack.c.bf16 %v3453_v54, %v3453_v54 }
 0x270   :  { %1396 = vmatmul.mubr.bf16.vlgmr.msra.gmra.mrb[12].mxu1 %v1362_v56  ;;  %1437 = vmatmul.mubr.bf16.vlgmr.msra.gmra.mrb[16].mxu0 %v1362_v56 }
 0x271   :  { %1517 = vmatpush1.bf16.msra.mxu1 %v3295_v1  ;;  %1558 = vmatpush1.bf16.msra.mxu0 %v3297_v2 }
 0x272   :  { %1518 = vmatprep.subr.bf16.mxu1 %v3299_v4  ;;  %1559 = vmatprep.subr.bf16.mxu0 %v3301_v5 }
 0x273   :  { %1548 = vmatprep.mubr.bf16.mxu1 %v3153_v36  ;;  %1589 = vmatprep.mubr.bf16.mxu0 %v3153_v36 }
 0x275   :  { %1519 = vmatpush1.bf16.msra.mxu1 %v3305_v6  ;;  %1560 = vmatpush1.bf16.msra.mxu0 %v3307_v7 }
 0x276   :  { %1520 = vmatprep.subr.bf16.mxu1 %v3311_v8  ;;  %1561 = vmatprep.subr.bf16.mxu0 %v3313_v9 }
 0x279   :  { %1521 = vmatpush1.bf16.msra.mxu1 %v3319_v10  ;;  %1562 = vmatpush1.bf16.msra.mxu0 %v3321_v11 }
 0x27a   :  { %1522 = vmatprep.subr.bf16.mxu1 %v3325_v12  ;;  %1563 = vmatprep.subr.bf16.mxu0 %v3327_v13 }
 0x27d   :  { %1523 = vmatpush1.bf16.msra.mxu1 %v3331_v14  ;;  %1564 = vmatpush1.bf16.msra.mxu0 %v3333_v15 }
 0x27e   :  { %1524 = vmatprep.subr.bf16.mxu1 %v3337_v16  ;;  %1565 = vmatprep.subr.bf16.mxu0 %v3339_v17 }
 0x281   :  { %1525 = vmatpush1.bf16.msra.mxu1 %v3343_v18  ;;  %1566 = vmatpush1.bf16.msra.mxu0 %v3345_v19 }
 0x282   :  { %1526 = vmatprep.subr.bf16.mxu1 %v3349_v20  ;;  %1567 = vmatprep.subr.bf16.mxu0 %v3351_v21 }
 0x285   :  { %1527 = vmatpush1.bf16.msra.mxu1 %v3355_v22  ;;  %1568 = vmatpush1.bf16.msra.mxu0 %v3357_v23 }
 0x286   :  { %1528 = vmatprep.subr.bf16.mxu1 %v3361_v24  ;;  %1569 = vmatprep.subr.bf16.mxu0 %v3363_v25 }
 0x289   :  { %1529 = vmatpush1.bf16.msra.mxu1 %v3367_v26  ;;  %1570 = vmatpush1.bf16.msra.mxu0 %v3369_v27 }
 0x28a   :  { %1530 = vmatprep.subr.bf16.mxu1 %v3373_v28  ;;  %1571 = vmatprep.subr.bf16.mxu0 %v3375_v29 }
 0x28d   :  { %1531 = vmatpush1.bf16.msra.mxu1 %v3379_v30  ;;  %1572 = vmatpush1.bf16.msra.mxu0 %v3381_v31 }
 0x28e   :  { %1669 = vmatprep.subr.bf16.mxu1 %v3282_v34  ;;  %1710 = vmatprep.subr.bf16.mxu0 %v3284_v35 }
 0x343   :  { %v1397_v40 = vpop.f32.mrb[12].mxu1  ;;  %v1438_v46 = vpop.f32.mrb[16].mxu0 }
 0x344   :  { %v1445_v47 = vadd.f32 %v1397_v40, %v1358_v39  ;;  %v1447_v48 = vadd.f32 %v1438_v46, %v1360_v43  ;;  %v1399_v50 = vpop.f32.mrb[13].mxu1  ;;  %v1440_v32 = vpop.f32.mrb[17].mxu0 }
 0x345   :  { %v1446_v33 = vadd.f32 %v1399_v50, %v1359_v49  ;;  %v1448_v53 = vadd.f32 %v1440_v32, %v1361_v51  ;;  %v1401_v55 = vpop.f32.mrb[14].mxu1  ;;  %v1442_v56 = vpop.f32.mrb[18].mxu0 }
 0x346   :  { %2946 = vtanh.f32 %v1445_v47  ;;  %v1402_v57 = vpop.f32.mrb[15].mxu1  ;;  %v1443_v58 = vpop.f32.mrb[19].mxu0  ;;  %v966_v47 = vld [vmem:[#allocation4] sm:$0x3] }
 0x347   :  { %2948 = vtanh.f32 %v1446_v33  ;;  %v1311_v50 = vmax.f32 %v966_v47, %v3453_v54  ;;  %v1466_v54 = vld [vmem:[#allocation5 + $0x2] ss:$8 sm:$0xf] }
 0x348   :  { %2950 = vtanh.f32 %v1447_v48  ;;  %v1473_v58 = vrot.slane %v1466_v54, %v3423_v41 }
 0x349   :  { %2952 = vtanh.f32 %v1448_v53 }
 0x350   :  { %v2947_v59 = vpop.eup %2946 }
 0x351   :  { %v1453_v60 = vmul.f32 0.5, %v2947_v59  ;;  %v2949_v63 = vpop.eup %2948  ;;  %v1481_v59 = vrot.slane %v1466_v54, %v3425_v42 }
 0x352   :  { %v1455_v39 = vmul.f32 0.5, %v2949_v63  ;;  %v2951_v61 = vpop.eup %2950  ;;  %v1485_v63 = vrot.slane %v1466_v54, %v3432_v45 }
 0x353   :  { %v1454_v0 = vadd.f32 0.5, %v1453_v60  ;;  %v2953_v43 = vpop.eup %2952  ;;  %v1477_v60 = vrot.slane %v1466_v54, %v3430_v44 }
 0x354   :  { %v1456_v3 = vadd.f32 0.5, %v1455_v39  ;;  %v1457_v46 = vmul.f32 0.5, %v2953_v43 }
 0x355   :  { %v1460_v40 = vmul.f32 %v2951_v61, %v1454_v0 }
 0x356   :  { %v1459_v62 = vmul.f32 %v1456_v3, %v3450_v52  ;;  %v1458_v49 = vadd.f32 0.5, %v1457_v46  ;;  %v1468_v52 = vld [vmem:[#allocation5 + $0x22] ss:$8 sm:$0xf] }
 0x357   :  { %v1494_v53 = vrot.slane %v1468_v52, %v3423_v41  ;;  %v1502_v55 = vrot.slane %v1468_v52, %v3425_v42  ;;  %v1498_v56 = vrot.slane %v1468_v52, %v3430_v44  ;;  %v1506_v57 = vrot.slane %v1468_v52, %v3432_v45 }
 0x358   :  { %v3504_v38 = vadd.f32 %v1460_v40, %v1459_v62 }
 0x359   :  { %v1511_v0 = vsel %vm1012_vm0, %v1473_v58, %v1494_v53  ;;  %v1513_v61 = vsel %vm1012_vm0, %v1481_v59, %v1502_v55  ;;  %v1512_v43 = vsel %vm1012_vm0, %v1477_v60, %v1498_v56  ;;  %v1514_v47 = vsel %vm1012_vm0, %v1485_v63, %v1506_v57 }
 0x35a   :  { %2954 = vtanh.f32 %v3504_v38 }
 0x364   :  { %v2955_v48 = vpop.eup %2954 }
 0x365   :  { %v1463_v51 = vmul.f32 %v2955_v48, %v1458_v49 }
 0x367   :  { %v3508_v32 = vmax.f32 %v1311_v50, %v1463_v51  ;;  %v1515_v33 = vpack.c.bf16 %v1463_v51, %v1463_v51 }
 0x369   :  { %1549 = vmatmul.mubr.bf16.vlgmr.msra.gmra.mrb[16].mxu1 %v1515_v33  ;;  %1590 = vmatmul.mubr.bf16.vlgmr.msra.gmra.mrb[20].mxu0 %v1515_v33 }
 0x36a   :  { %1670 = vmatpush1.bf16.msra.mxu1 %v3295_v1  ;;  %1711 = vmatpush1.bf16.msra.mxu0 %v3297_v2 }
 0x36b   :  { %1671 = vmatprep.subr.bf16.mxu1 %v3299_v4  ;;  %1712 = vmatprep.subr.bf16.mxu0 %v3301_v5 }
 0x36c   :  { %1701 = vmatprep.mubr.bf16.mxu1 %v3153_v36  ;;  %1742 = vmatprep.mubr.bf16.mxu0 %v3153_v36 }
 0x36e   :  { %1672 = vmatpush1.bf16.msra.mxu1 %v3305_v6  ;;  %1713 = vmatpush1.bf16.msra.mxu0 %v3307_v7 }
 0x36f   :  { %1673 = vmatprep.subr.bf16.mxu1 %v3311_v8  ;;  %1714 = vmatprep.subr.bf16.mxu0 %v3313_v9 }
 0x372   :  { %1674 = vmatpush1.bf16.msra.mxu1 %v3319_v10  ;;  %1715 = vmatpush1.bf16.msra.mxu0 %v3321_v11 }
 0x373   :  { %1675 = vmatprep.subr.bf16.mxu1 %v3325_v12  ;;  %1716 = vmatprep.subr.bf16.mxu0 %v3327_v13 }
 0x376   :  { %1676 = vmatpush1.bf16.msra.mxu1 %v3331_v14  ;;  %1717 = vmatpush1.bf16.msra.mxu0 %v3333_v15 }
 0x377   :  { %1677 = vmatprep.subr.bf16.mxu1 %v3337_v16  ;;  %1718 = vmatprep.subr.bf16.mxu0 %v3339_v17 }
 0x37a   :  { %1678 = vmatpush1.bf16.msra.mxu1 %v3343_v18  ;;  %1719 = vmatpush1.bf16.msra.mxu0 %v3345_v19 }
 0x37b   :  { %1679 = vmatprep.subr.bf16.mxu1 %v3349_v20  ;;  %1720 = vmatprep.subr.bf16.mxu0 %v3351_v21 }
 0x37e   :  { %1680 = vmatpush1.bf16.msra.mxu1 %v3355_v22  ;;  %1721 = vmatpush1.bf16.msra.mxu0 %v3357_v23 }
 0x37f   :  { %1681 = vmatprep.subr.bf16.mxu1 %v3361_v24  ;;  %1722 = vmatprep.subr.bf16.mxu0 %v3363_v25 }
 0x382   :  { %1682 = vmatpush1.bf16.msra.mxu1 %v3367_v26  ;;  %1723 = vmatpush1.bf16.msra.mxu0 %v3369_v27 }
 0x383   :  { %1683 = vmatprep.subr.bf16.mxu1 %v3373_v28  ;;  %1724 = vmatprep.subr.bf16.mxu0 %v3375_v29 }
 0x386   :  { %1684 = vmatpush1.bf16.msra.mxu1 %v3379_v30  ;;  %1725 = vmatpush1.bf16.msra.mxu0 %v3381_v31 }
 0x387   :  { %1822 = vmatprep.subr.bf16.mxu1 %v3282_v34  ;;  %1863 = vmatprep.subr.bf16.mxu0 %v3284_v35 }
 0x43c   :  { %v1550_v39 = vpop.f32.mrb[16].mxu1  ;;  %v1591_v3 = vpop.f32.mrb[20].mxu0 }
 0x43d   :  { %v1598_v40 = vadd.f32 %v1550_v39, %v1511_v0  ;;  %v1600_v62 = vadd.f32 %v1591_v3, %v1513_v61  ;;  %v1552_v46 = vpop.f32.mrb[17].mxu1  ;;  %v1593_v49 = vpop.f32.mrb[21].mxu0 }
 0x43e   :  { %v1599_v48 = vadd.f32 %v1552_v46, %v1512_v43  ;;  %v1601_v50 = vadd.f32 %v1593_v49, %v1514_v47  ;;  %v1554_v51 = vpop.f32.mrb[18].mxu1  ;;  %v1595_v33 = vpop.f32.mrb[22].mxu0  ;;  %v1619_v49 = vld [vmem:[#allocation5 + $0x3] ss:$8 sm:$0xf] }
 0x43f   :  { %2956 = vtanh.f32 %v1598_v40  ;;  %v1555_v52 = vpop.f32.mrb[19].mxu1  ;;  %v1596_v54 = vpop.f32.mrb[23].mxu0 }
 0x440   :  { %2958 = vtanh.f32 %v1599_v48  ;;  %v1626_v52 = vrot.slane %v1619_v49, %v3423_v41  ;;  %v1634_v54 = vrot.slane %v1619_v49, %v3425_v42 }
 0x441   :  { %2960 = vtanh.f32 %v1600_v62 }
 0x442   :  { %2962 = vtanh.f32 %v1601_v50 }
 0x449   :  { %v2957_v53 = vpop.eup %2956 }
 0x44a   :  { %v1606_v55 = vmul.f32 0.5, %v2957_v53  ;;  %v2959_v58 = vpop.eup %2958  ;;  %v1630_v53 = vrot.slane %v1619_v49, %v3430_v44 }
 0x44b   :  { %v1608_v0 = vmul.f32 0.5, %v2959_v58  ;;  %v2961_v56 = vpop.eup %2960 }
 0x44c   :  { %v1607_v59 = vadd.f32 0.5, %v1606_v55  ;;  %v2963_v61 = vpop.eup %2962 }
 0x44d   :  { %v1609_v60 = vadd.f32 0.5, %v1608_v0  ;;  %v1610_v3 = vmul.f32 0.5, %v2963_v61 }
 0x44e   :  { %v1613_v39 = vmul.f32 %v2961_v56, %v1607_v59 }
 0x44f   :  { %v1612_v57 = vmul.f32 %v1609_v60, %v3504_v38  ;;  %v1611_v40 = vadd.f32 0.5, %v1610_v3  ;;  %v1621_v38 = vld [vmem:[#allocation5 + $0x23] ss:$8 sm:$0xf] }
 0x450   :  { %v1647_v48 = vrot.slane %v1621_v38, %v3423_v41  ;;  %v1655_v50 = vrot.slane %v1621_v38, %v3425_v42  ;;  %v1651_v51 = vrot.slane %v1621_v38, %v3430_v44  ;;  %v1659_v33 = vrot.slane %v1621_v38, %v3432_v45 }
 0x451   :  { %v3557_v63 = vadd.f32 %v1613_v39, %v1612_v57 }
 0x452   :  { %v1666_v58 = vsel %vm1012_vm0, %v1634_v54, %v1655_v50  ;;  %v1665_v60 = vsel %vm1012_vm0, %v1630_v53, %v1651_v51 }
 0x453   :  { %2964 = vtanh.f32 %v3557_v63 }
 0x45d   :  { %v2965_v43 = vpop.eup %2964 }
 0x45e   :  { %v3560_v62 = vmul.f32 %v2965_v43, %v1611_v40 }
 0x460   :  { %v1617_v46 = vmax.f32 %v3508_v32, %v3560_v62  ;;  %v1668_v47 = vpack.c.bf16 %v3560_v62, %v3560_v62 }
 0x462   :  { %1702 = vmatmul.mubr.bf16.vlgmr.msra.gmra.mrb[20].mxu1 %v1668_v47  ;;  %1743 = vmatmul.mubr.bf16.vlgmr.msra.gmra.mrb[24].mxu0 %v1668_v47 }
 0x463   :  { %1823 = vmatpush1.bf16.msra.mxu1 %v3295_v1  ;;  %1864 = vmatpush1.bf16.msra.mxu0 %v3297_v2 }
 0x464   :  { %1824 = vmatprep.subr.bf16.mxu1 %v3299_v4  ;;  %1865 = vmatprep.subr.bf16.mxu0 %v3301_v5 }
 0x465   :  { %1854 = vmatprep.mubr.bf16.mxu1 %v3153_v36  ;;  %1895 = vmatprep.mubr.bf16.mxu0 %v3153_v36 }
 0x467   :  { %1825 = vmatpush1.bf16.msra.mxu1 %v3305_v6  ;;  %1866 = vmatpush1.bf16.msra.mxu0 %v3307_v7 }
 0x468   :  { %1826 = vmatprep.subr.bf16.mxu1 %v3311_v8  ;;  %1867 = vmatprep.subr.bf16.mxu0 %v3313_v9 }
 0x46b   :  { %1827 = vmatpush1.bf16.msra.mxu1 %v3319_v10  ;;  %1868 = vmatpush1.bf16.msra.mxu0 %v3321_v11 }
 0x46c   :  { %1828 = vmatprep.subr.bf16.mxu1 %v3325_v12  ;;  %1869 = vmatprep.subr.bf16.mxu0 %v3327_v13 }
 0x46f   :  { %1829 = vmatpush1.bf16.msra.mxu1 %v3331_v14  ;;  %1870 = vmatpush1.bf16.msra.mxu0 %v3333_v15 }
 0x470   :  { %1830 = vmatprep.subr.bf16.mxu1 %v3337_v16  ;;  %1871 = vmatprep.subr.bf16.mxu0 %v3339_v17 }
 0x473   :  { %1831 = vmatpush1.bf16.msra.mxu1 %v3343_v18  ;;  %1872 = vmatpush1.bf16.msra.mxu0 %v3345_v19 }
 0x474   :  { %1832 = vmatprep.subr.bf16.mxu1 %v3349_v20  ;;  %1873 = vmatprep.subr.bf16.mxu0 %v3351_v21 }
 0x477   :  { %1833 = vmatpush1.bf16.msra.mxu1 %v3355_v22  ;;  %1874 = vmatpush1.bf16.msra.mxu0 %v3357_v23 }
 0x478   :  { %1834 = vmatprep.subr.bf16.mxu1 %v3361_v24  ;;  %1875 = vmatprep.subr.bf16.mxu0 %v3363_v25 }
 0x47b   :  { %1835 = vmatpush1.bf16.msra.mxu1 %v3367_v26  ;;  %1876 = vmatpush1.bf16.msra.mxu0 %v3369_v27 }
 0x47c   :  { %1836 = vmatprep.subr.bf16.mxu1 %v3373_v28  ;;  %1877 = vmatprep.subr.bf16.mxu0 %v3375_v29 }
 0x47f   :  { %1837 = vmatpush1.bf16.msra.mxu1 %v3379_v30  ;;  %1878 = vmatpush1.bf16.msra.mxu0 %v3381_v31 }
 0x480   :  { %1975 = vmatprep.subr.bf16.mxu1 %v3282_v34  ;;  %2016 = vmatprep.subr.bf16.mxu0 %v3284_v35  ;;  %v1638_v34 = vrot.slane %v1619_v49, %v3432_v45  ;;  %v1664_v35 = vsel %vm1012_vm0, %v1626_v52, %v1647_v48 }
 0x482   :  { %v1667_v57 = vsel %vm1012_vm0, %v1638_v34, %v1659_v33 }
 0x535   :  { %v1703_v55 = vpop.f32.mrb[20].mxu1  ;;  %v1744_v59 = vpop.f32.mrb[24].mxu0 }
 0x536   :  { %v1751_v0 = vadd.f32 %v1703_v55, %v1664_v35  ;;  %v1753_v56 = vadd.f32 %v1744_v59, %v1666_v58  ;;  %v1705_v39 = vpop.f32.mrb[21].mxu1  ;;  %v1746_v61 = vpop.f32.mrb[25].mxu0 }
 0x537   :  { %v1752_v3 = vadd.f32 %v1705_v39, %v1665_v60  ;;  %v1754_v40 = vadd.f32 %v1746_v61, %v1667_v57  ;;  %v1707_v43 = vpop.f32.mrb[22].mxu1  ;;  %v1748_v47 = vpop.f32.mrb[26].mxu0 }
 0x538   :  { %2966 = vtanh.f32 %v1751_v0  ;;  %v1708_v38 = vpop.f32.mrb[23].mxu1  ;;  %v1749_v49 = vpop.f32.mrb[27].mxu0 }
 0x539   :  { %2968 = vtanh.f32 %v1752_v3 }
 0x53a   :  { %2970 = vtanh.f32 %v1753_v56 }
 0x53b   :  { %2972 = vtanh.f32 %v1754_v40 }
 0x542   :  { %v2967_v48 = vpop.eup %2966 }
 0x543   :  { %v1759_v50 = vmul.f32 0.5, %v2967_v48  ;;  %v2969_v52 = vpop.eup %2968 }
 0x544   :  { %v1761_v35 = vmul.f32 0.5, %v2969_v52  ;;  %v2971_v51 = vpop.eup %2970 }
 0x545   :  { %v1760_v54 = vadd.f32 0.5, %v1759_v50  ;;  %v2973_v58 = vpop.eup %2972 }
 0x546   :  { %v1762_v53 = vadd.f32 0.5, %v1761_v35  ;;  %v1763_v59 = vmul.f32 0.5, %v2973_v58 }
 0x547   :  { %v1766_v55 = vmul.f32 %v2971_v51, %v1760_v54 }
 0x548   :  { %v1765_v33 = vmul.f32 %v1762_v53, %v3557_v63  ;;  %v1764_v0 = vadd.f32 0.5, %v1763_v59 }
 0x54a   :  { %v3613_v34 = vadd.f32 %v1766_v55, %v1765_v33 }
 0x54c   :  { %2974 = vtanh.f32 %v3613_v34 }
 0x556   :  { %v2975_v60 = vpop.eup %2974 }
 0x557   :  { %v1769_v56 = vmul.f32 %v2975_v60, %v1764_v0 }
 0x559   :  { %v3619_v39 = vmax.f32 %v1617_v46, %v1769_v56  ;;  %v1821_v57 = vpack.c.bf16 %v1769_v56, %v1769_v56 }
 0x55b   :  { %1855 = vmatmul.mubr.bf16.vlgmr.msra.gmra.mrb[24].mxu1 %v1821_v57  ;;  %1896 = vmatmul.mubr.bf16.vlgmr.msra.gmra.mrb[28].mxu0 %v1821_v57  ;;  %v3681_v57 = vld [vmem:[#allocation11] ss:$16 sps:$4 sm:$0xff]  }
 0x55c   :  { %1976 = vmatpush1.bf16.msra.mxu1 %v3295_v1  ;;  %2017 = vmatpush1.bf16.msra.mxu0 %v3297_v2  ;;  %v3653_v1 = vld [vmem:[#allocation11 + $0x4] ss:$16 sps:$4 sm:$0xff]   ;;  %v3656_v2 = vld [vmem:[#allocation11 + $0xc] ss:$16 sps:$4 sm:$0xff]  }
 0x55d   :  { %1977 = vmatprep.subr.bf16.mxu1 %v3299_v4  ;;  %2018 = vmatprep.subr.bf16.mxu0 %v3301_v5  ;;  %v1774_v4 = vld [vmem:[#allocation5 + $0x24] ss:$8 sm:$0xf] }
 0x55e   :  { %2007 = vmatprep.mubr.bf16.mxu1 %v3153_v36  ;;  %2048 = vmatprep.mubr.bf16.mxu0 %v3153_v36  ;;  %v1772_v5 = vld [vmem:[#allocation5 + $0x4] ss:$8 sm:$0xf] }
 0x560   :  { %1978 = vmatpush1.bf16.msra.mxu1 %v3305_v6  ;;  %2019 = vmatpush1.bf16.msra.mxu0 %v3307_v7  ;;  %v1800_v6 = vrot.slane %v1774_v4, %v3423_v41  ;;  %v1808_v7 = vrot.slane %v1774_v4, %v3425_v42 }
 0x561   :  { %1979 = vmatprep.subr.bf16.mxu1 %v3311_v8  ;;  %2020 = vmatprep.subr.bf16.mxu0 %v3313_v9  ;;  %v1804_v8 = vrot.slane %v1774_v4, %v3430_v44  ;;  %v1812_v9 = vrot.slane %v1774_v4, %v3432_v45  ;;  %v3687_v4 = vld [vmem:[#allocation11 + $0x24] ss:$16 sps:$4 sm:$0xff]  }
 0x564   :  { %1980 = vmatpush1.bf16.msra.mxu1 %v3319_v10  ;;  %2021 = vmatpush1.bf16.msra.mxu0 %v3321_v11  ;;  %v1779_v10 = vrot.slane %v1772_v5, %v3423_v41  ;;  %v1787_v11 = vrot.slane %v1772_v5, %v3425_v42 }
 0x565   :  { %1981 = vmatprep.subr.bf16.mxu1 %v3325_v12  ;;  %2022 = vmatprep.subr.bf16.mxu0 %v3327_v13  ;;  %v1783_v12 = vrot.slane %v1772_v5, %v3430_v44  ;;  %v1791_v13 = vrot.slane %v1772_v5, %v3432_v45  ;;  %v3690_v5 = vld [vmem:[#allocation11 + $0x2c] ss:$16 sps:$4 sm:$0xff]  }
 0x567   :  { %v1820_v32 = vsel %vm1012_vm0, %v1791_v13, %v1812_v9  ;;  %v3704_v9 = vld [vmem:[#allocation11 + $0x4c] ss:$16 sps:$4 sm:$0xff]  }
 0x568   :  { %1982 = vmatpush1.bf16.msra.mxu1 %v3331_v14  ;;  %2023 = vmatpush1.bf16.msra.mxu0 %v3333_v15  ;;  %v1817_v14 = vsel %vm1012_vm0, %v1779_v10, %v1800_v6  ;;  %v3695_v6 = vld [vmem:[#allocation11 + $0x20] ss:$16 sps:$4 sm:$0xff]   ;;  %v3716_v13 = vld [vmem:[#allocation11 + $0x6c] ss:$16 sps:$4 sm:$0xff]  }
 0x569   :  { %1983 = vmatprep.subr.bf16.mxu1 %v3337_v16  ;;  %2024 = vmatprep.subr.bf16.mxu0 %v3339_v17  ;;  %v1819_v16 = vsel %vm1012_vm0, %v1787_v11, %v1808_v7  ;;  %v3698_v7 = vld [vmem:[#allocation11 + $0x28] ss:$16 sps:$4 sm:$0xff]   ;;  %v3707_v10 = vld [vmem:[#allocation11 + $0x40] ss:$16 sps:$4 sm:$0xff]  }
 0x56a   :  { %v3710_v11 = vld [vmem:[#allocation11 + $0x48] ss:$16 sps:$4 sm:$0xff]  }
 0x56c   :  { %1984 = vmatpush1.bf16.msra.mxu1 %v3343_v18  ;;  %2025 = vmatpush1.bf16.msra.mxu0 %v3345_v19 }
 0x56d   :  { %1985 = vmatprep.subr.bf16.mxu1 %v3349_v20  ;;  %2026 = vmatprep.subr.bf16.mxu0 %v3351_v21  ;;  %v1818_v20 = vsel %vm1012_vm0, %v1783_v12, %v1804_v8  ;;  %v3701_v8 = vld [vmem:[#allocation11 + $0x44] ss:$16 sps:$4 sm:$0xff]  }
 0x56e   :  { %v3713_v12 = vld [vmem:[#allocation11 + $0x64] ss:$16 sps:$4 sm:$0xff]  }
 0x570   :  { %1986 = vmatpush1.bf16.msra.mxu1 %v3355_v22  ;;  %2027 = vmatpush1.bf16.msra.mxu0 %v3357_v23 }
 0x571   :  { %1987 = vmatprep.subr.bf16.mxu1 %v3361_v24  ;;  %2028 = vmatprep.subr.bf16.mxu0 %v3363_v25 }
 0x574   :  { %1988 = vmatpush1.bf16.msra.mxu1 %v3367_v26  ;;  %2029 = vmatpush1.bf16.msra.mxu0 %v3369_v27 }
 0x575   :  { %1989 = vmatprep.subr.bf16.mxu1 %v3373_v28  ;;  %2030 = vmatprep.subr.bf16.mxu0 %v3375_v29 }
 0x578   :  { %1990 = vmatpush1.bf16.msra.mxu1 %v3379_v30  ;;  %2031 = vmatpush1.bf16.msra.mxu0 %v3381_v31 }
 0x579   :  { %2128 = vmatprep.subr.bf16.mxu1 %v3653_v1  ;;  %2169 = vmatprep.subr.bf16.mxu0 %v3656_v2 }
 0x62e   :  { %v1856_v15 = vpop.f32.mrb[24].mxu1  ;;  %v1897_v17 = vpop.f32.mrb[28].mxu0 }
 0x62f   :  { %v1904_v18 = vadd.f32 %v1856_v15, %v1817_v14  ;;  %v1906_v19 = vadd.f32 %v1897_v17, %v1819_v16  ;;  %v1858_v21 = vpop.f32.mrb[25].mxu1  ;;  %v1899_v63 = vpop.f32.mrb[29].mxu0  ;;  %v3719_v14 = vld [vmem:[#allocation11 + $0x60] ss:$16 sps:$4 sm:$0xff]   ;;  %v3722_v15 = vld [vmem:[#allocation11 + $0x68] ss:$16 sps:$4 sm:$0xff]  }
 0x630   :  { %v1905_v62 = vadd.f32 %v1858_v21, %v1818_v20  ;;  %v1907_v46 = vadd.f32 %v1899_v63, %v1820_v32  ;;  %v1860_v61 = vpop.f32.mrb[26].mxu1  ;;  %v1901_v3 = vpop.f32.mrb[30].mxu0  ;;  %v3725_v16 = vld [vmem:[#allocation11 + $0x84] ss:$16 sps:$4 sm:$0xff]   ;;  %v3728_v17 = vld [vmem:[#allocation11 + $0x8c] ss:$16 sps:$4 sm:$0xff]  }
 0x631   :  { %2976 = vtanh.f32 %v1904_v18  ;;  %v1861_v40 = vpop.f32.mrb[27].mxu1  ;;  %v1902_v43 = vpop.f32.mrb[31].mxu0  ;;  %v3731_v18 = vld [vmem:[#allocation11 + $0x80] ss:$16 sps:$4 sm:$0xff]   ;;  %v3737_v20 = vld [vmem:[#allocation11 + $0xa4] ss:$16 sps:$4 sm:$0xff]  }
 0x632   :  { %2978 = vtanh.f32 %v1905_v62  ;;  %v3740_v21 = vld [vmem:[#allocation11 + $0xac] ss:$16 sps:$4 sm:$0xff]  }
 0x633   :  { %2980 = vtanh.f32 %v1906_v19  ;;  %v3734_v19 = vld [vmem:[#allocation11 + $0x88] ss:$16 sps:$4 sm:$0xff]  }
 0x634   :  { %2982 = vtanh.f32 %v1907_v46 }
 0x63b   :  { %v2977_v47 = vpop.eup %2976 }
 0x63c   :  { %v1912_v38 = vmul.f32 0.5, %v2977_v47  ;;  %v2979_v49 = vpop.eup %2978 }
 0x63d   :  { %v1914_v50 = vmul.f32 0.5, %v2979_v49  ;;  %v2981_v52 = vpop.eup %2980 }
 0x63e   :  { %v1913_v48 = vadd.f32 0.5, %v1912_v38  ;;  %v2983_v55 = vpop.eup %2982 }
 0x63f   :  { %v1915_v54 = vadd.f32 0.5, %v1914_v50  ;;  %v1916_v33 = vmul.f32 0.5, %v2983_v55 }
 0x640   :  { %v1919_v35 = vmul.f32 %v2981_v52, %v1913_v48 }
 0x641   :  { %v1918_v51 = vmul.f32 %v1915_v54, %v3613_v34  ;;  %v1917_v58 = vadd.f32 0.5, %v1916_v33  ;;  %v3684_v34 = vld [vmem:[#allocation11 + $0x8] ss:$16 sps:$4 sm:$0xff]  }
 0x643   :  { %v3672_v53 = vadd.f32 %v1919_v35, %v1918_v51 }
 0x645   :  { %2984 = vtanh.f32 %v3672_v53 }
 0x64f   :  { %v2985_v59 = vpop.eup %2984 }
 0x650   :  { %v3675_v0 = vmul.f32 %v2985_v59, %v1917_v58 }
 0x652   :  { %v1923_v60 = vmax.f32 %v3619_v39, %v3675_v0  ;;  %v1974_v56 = vpack.c.bf16 %v3675_v0, %v3675_v0  ;;  %v3043_v39 = vld [vmem:[#allocation11 + $0xa8] ss:$16 sps:$4 sm:$0xff]   ;;  %v3045_v0 = vld [vmem:[#allocation11 + $0xcc] ss:$16 sps:$4 sm:$0xff]  }
 0x654   :  { %2008 = vmatmul.mubr.bf16.vlgmr.msra.gmra.mrb[28].mxu1 %v1974_v56  ;;  %2049 = vmatmul.mubr.bf16.vlgmr.msra.gmra.mrb[32].mxu0 %v1974_v56 }
 0x655   :  { %2129 = vmatpush1.bf16.msra.mxu1 %v3681_v57  ;;  %2170 = vmatpush1.bf16.msra.mxu0 %v3684_v34 }
 0x656   :  { %2130 = vmatprep.subr.bf16.mxu1 %v3687_v4  ;;  %2171 = vmatprep.subr.bf16.mxu0 %v3690_v5 }
 0x657   :  { %2160 = vmatprep.mubr.bf16.mxu1 %v3153_v36  ;;  %2201 = vmatprep.mubr.bf16.mxu0 %v3153_v36 }
 0x659   :  { %2131 = vmatpush1.bf16.msra.mxu1 %v3695_v6  ;;  %2172 = vmatpush1.bf16.msra.mxu0 %v3698_v7 }
 0x65a   :  { %2132 = vmatprep.subr.bf16.mxu1 %v3701_v8  ;;  %2173 = vmatprep.subr.bf16.mxu0 %v3704_v9 }
 0x65d   :  { %2133 = vmatpush1.bf16.msra.mxu1 %v3707_v10  ;;  %2174 = vmatpush1.bf16.msra.mxu0 %v3710_v11 }
 0x65e   :  { %2134 = vmatprep.subr.bf16.mxu1 %v3713_v12  ;;  %2175 = vmatprep.subr.bf16.mxu0 %v3716_v13 }
 0x661   :  { %2135 = vmatpush1.bf16.msra.mxu1 %v3719_v14  ;;  %2176 = vmatpush1.bf16.msra.mxu0 %v3722_v15 }
 0x662   :  { %2136 = vmatprep.subr.bf16.mxu1 %v3725_v16  ;;  %2177 = vmatprep.subr.bf16.mxu0 %v3728_v17 }
 0x665   :  { %2137 = vmatpush1.bf16.msra.mxu1 %v3731_v18  ;;  %2178 = vmatpush1.bf16.msra.mxu0 %v3734_v19 }
 0x666   :  { %2138 = vmatprep.subr.bf16.mxu1 %v3737_v20  ;;  %2179 = vmatprep.subr.bf16.mxu0 %v3740_v21 }
 0x669   :  { %2139 = vmatpush1.bf16.msra.mxu1 %v3355_v22  ;;  %2180 = vmatpush1.bf16.msra.mxu0 %v3357_v23  ;;  %v1927_v22 = vld [vmem:[#allocation5 + $0x25] ss:$8 sm:$0xf] }
 0x66a   :  { %2140 = vmatprep.subr.bf16.mxu1 %v3361_v24  ;;  %2181 = vmatprep.subr.bf16.mxu0 %v3363_v25  ;;  %v1925_v23 = vld [vmem:[#allocation5 + $0x5] ss:$8 sm:$0xf]  ;;  %v1953_v24 = vrot.slane %v1927_v22, %v3423_v41  ;;  %v1961_v25 = vrot.slane %v1927_v22, %v3425_v42 }
 0x66d   :  { %2141 = vmatpush1.bf16.msra.mxu1 %v3367_v26  ;;  %2182 = vmatpush1.bf16.msra.mxu0 %v3369_v27  ;;  %v1957_v26 = vrot.slane %v1927_v22, %v3430_v44  ;;  %v1965_v27 = vrot.slane %v1927_v22, %v3432_v45 }
 0x66e   :  { %2142 = vmatprep.subr.bf16.mxu1 %v3373_v28  ;;  %2183 = vmatprep.subr.bf16.mxu0 %v3375_v29  ;;  %v1932_v28 = vrot.slane %v1925_v23, %v3423_v41  ;;  %v1940_v29 = vrot.slane %v1925_v23, %v3425_v42 }
 0x670   :  { %v1972_v32 = vsel %vm1012_vm0, %v1940_v29, %v1961_v25 }
 0x671   :  { %2143 = vmatpush1.bf16.msra.mxu1 %v3379_v30  ;;  %2184 = vmatpush1.bf16.msra.mxu0 %v3381_v31  ;;  %v1936_v30 = vrot.slane %v1925_v23, %v3430_v44  ;;  %v1944_v31 = vrot.slane %v1925_v23, %v3432_v45 }
 0x672   :  { %2281 = vmatprep.subr.bf16.mxu1 %v3653_v1  ;;  %2322 = vmatprep.subr.bf16.mxu0 %v3656_v2  ;;  %v1970_v1 = vsel %vm1012_vm0, %v1932_v28, %v1953_v24 }
 0x673   :  { %v1971_v61 = vsel %vm1012_vm0, %v1936_v30, %v1957_v26  ;;  %v1973_v40 = vsel %vm1012_vm0, %v1944_v31, %v1965_v27 }
 0x727   :  { %v2009_v2 = vpop.f32.mrb[28].mxu1  ;;  %v2050_v63 = vpop.f32.mrb[32].mxu0 }
 0x728   :  { %v2057_v62 = vadd.f32 %v2009_v2, %v1970_v1  ;;  %v2059_v46 = vadd.f32 %v2050_v63, %v1972_v32  ;;  %v2011_v3 = vpop.f32.mrb[29].mxu1  ;;  %v2052_v43 = vpop.f32.mrb[33].mxu0 }
 0x729   :  { %v2058_v47 = vadd.f32 %v2011_v3, %v1971_v61  ;;  %v2060_v38 = vadd.f32 %v2052_v43, %v1973_v40  ;;  %v2013_v49 = vpop.f32.mrb[30].mxu1  ;;  %v2054_v48 = vpop.f32.mrb[34].mxu0 }
 0x72a   :  { %2986 = vtanh.f32 %v2057_v62  ;;  %v2014_v50 = vpop.f32.mrb[31].mxu1  ;;  %v2055_v52 = vpop.f32.mrb[35].mxu0 }
 0x72b   :  { %2988 = vtanh.f32 %v2058_v47 }
 0x72c   :  { %2990 = vtanh.f32 %v2059_v46 }
 0x72d   :  { %2992 = vtanh.f32 %v2060_v38 }
 0x734   :  { %v2987_v54 = vpop.eup %2986 }
 0x735   :  { %v2065_v35 = vmul.f32 0.5, %v2987_v54  ;;  %v2989_v51 = vpop.eup %2988 }
 0x736   :  { %v2067_v33 = vmul.f32 0.5, %v2989_v51  ;;  %v2991_v58 = vpop.eup %2990 }
 0x737   :  { %v2066_v55 = vadd.f32 0.5, %v2065_v35  ;;  %v2993_v24 = vpop.eup %2992 }
 0x738   :  { %v2068_v59 = vadd.f32 0.5, %v2067_v33  ;;  %v2069_v25 = vmul.f32 0.5, %v2993_v24 }
 0x739   :  { %v2072_v56 = vmul.f32 %v2991_v58, %v2066_v55 }
 0x73a   :  { %v2071_v22 = vmul.f32 %v2068_v59, %v3672_v53  ;;  %v2070_v26 = vadd.f32 0.5, %v2069_v25  ;;  %v3044_v53 = vld [vmem:[#allocation11 + $0xc4] ss:$16 sps:$4 sm:$0xff]  }
 0x73c   :  { %v3768_v23 = vadd.f32 %v2072_v56, %v2071_v22 }
 0x73e   :  { %2994 = vtanh.f32 %v3768_v23 }
 0x748   :  { %v2995_v27 = vpop.eup %2994 }
 0x749   :  { %v2075_v28 = vmul.f32 %v2995_v27, %v2070_v26  ;;  %v2390_v26 = vld [vmem:[%s3909_s6 + $0x8] sm:$0xff] }
 0x74b   :  { %v3774_v29 = vmax.f32 %v1923_v60, %v2075_v28  ;;  %v2127_v30 = vpack.c.bf16 %v2075_v28, %v2075_v28  ;;  %v3046_v60 = vld [vmem:[#allocation11 + $0xc0] ss:$16 sps:$4 sm:$0xff]   ;;  %v3156_v28 = vmov 0.0|0.0  }
 0x74d   :  { %2161 = vmatmul.mubr.bf16.vlgmr.msra.gmra.mrb[32].mxu1 %v2127_v30  ;;  %2202 = vmatmul.mubr.bf16.vlgmr.msra.gmra.mrb[36].mxu0 %v2127_v30  ;;  %v2391_v30 = vld [vmem:[%s3909_s6 + $0x10] sm:$0xff] }
 0x74e   :  { %2282 = vmatpush1.bf16.msra.mxu1 %v3681_v57  ;;  %2323 = vmatpush1.bf16.msra.mxu0 %v3684_v34  ;;  %v3047_v57 = vld [vmem:[#allocation11 + $0xc8] ss:$16 sps:$4 sm:$0xff]   ;;  %v3048_v34 = vld [vmem:[#allocation11 + $0xe4] ss:$16 sps:$4 sm:$0xff]  }
 0x74f   :  { %2283 = vmatprep.subr.bf16.mxu1 %v3687_v4  ;;  %2324 = vmatprep.subr.bf16.mxu0 %v3690_v5  ;;  %v3049_v4 = vld [vmem:[#allocation11 + $0xec] ss:$16 sps:$4 sm:$0xff]   ;;  %v3050_v5 = vld [vmem:[#allocation11 + $0xe0] ss:$16 sps:$4 sm:$0xff]  }
 0x750   :  { %2313 = vmatprep.mubr.bf16.mxu1 %v3153_v36  ;;  %2354 = vmatprep.mubr.bf16.mxu0 %v3153_v36  ;;  %v3042_v36 = vld [vmem:[#allocation11 + $0xa0] ss:$16 sps:$4 sm:$0xff]  }
 0x752   :  { %2284 = vmatpush1.bf16.msra.mxu1 %v3695_v6  ;;  %2325 = vmatpush1.bf16.msra.mxu0 %v3698_v7  ;;  %v3051_v6 = vld [vmem:[#allocation11 + $0xe8] ss:$16 sps:$4 sm:$0xff]   ;;  %v2080_v7 = vld [vmem:[#allocation5 + $0x26] ss:$8 sm:$0xf] }
 0x753   :  { %2285 = vmatprep.subr.bf16.mxu1 %v3701_v8  ;;  %2326 = vmatprep.subr.bf16.mxu0 %v3704_v9  ;;  %v2078_v8 = vld [vmem:[#allocation5 + $0x6] ss:$8 sm:$0xf]  ;;  %v2106_v9 = vrot.slane %v2080_v7, %v3423_v41 }
 0x756   :  { %2286 = vmatpush1.bf16.msra.mxu1 %v3707_v10  ;;  %2327 = vmatpush1.bf16.msra.mxu0 %v3710_v11  ;;  %v2114_v10 = vrot.slane %v2080_v7, %v3425_v42  ;;  %v2110_v11 = vrot.slane %v2080_v7, %v3430_v44 }
 0x757   :  { %2287 = vmatprep.subr.bf16.mxu1 %v3713_v12  ;;  %2328 = vmatprep.subr.bf16.mxu0 %v3716_v13  ;;  %v2118_v12 = vrot.slane %v2080_v7, %v3432_v45  ;;  %v2085_v13 = vrot.slane %v2078_v8, %v3423_v41 }
 0x75a   :  { %2288 = vmatpush1.bf16.msra.mxu1 %v3719_v14  ;;  %2329 = vmatpush1.bf16.msra.mxu0 %v3722_v15  ;;  %v2093_v14 = vrot.slane %v2078_v8, %v3425_v42  ;;  %v2089_v15 = vrot.slane %v2078_v8, %v3430_v44 }
 0x75b   :  { %2289 = vmatprep.subr.bf16.mxu1 %v3725_v16  ;;  %2330 = vmatprep.subr.bf16.mxu0 %v3728_v17  ;;  %v2097_v16 = vrot.slane %v2078_v8, %v3432_v45  ;;  %v2123_v17 = vsel %vm1012_vm0, %v2085_v13, %v2106_v9  ;;  %v2399_v8 = vld [vmem:[%s3909_s6 + $0x50] sm:$0xff]  ;;  %v2400_v9 = vld [vmem:[%s3909_s6 + $0x58] sm:$0xff] }
 0x75c   :  { %v2124_v1 = vsel %vm1012_vm0, %v2089_v15, %v2110_v11  ;;  %v2401_v11 = vld [vmem:[%s3909_s6 + $0x60] sm:$0xff] }
 0x75d   :  { %v2126_v32 = vsel %vm1012_vm0, %v2097_v16, %v2118_v12  ;;  %v2402_v12 = vld [vmem:[%s3909_s6 + $0x68] sm:$0xff] }
 0x75e   :  { %2290 = vmatpush1.bf16.msra.mxu1 %v3731_v18  ;;  %2331 = vmatpush1.bf16.msra.mxu0 %v3734_v19  ;;  %v2125_v19 = vsel %vm1012_vm0, %v2093_v14, %v2114_v10  ;;  %v2771_v10 = vpack.c.bf16 %v2400_v9, %v2399_v8  ;;  %v2774_v13 = vpack.c.bf16 %v2402_v12, %v2401_v11  ;;  %v2403_v14 = vld [vmem:[%s3909_s6 + $0x70] sm:$0xff] }
 0x75f   :  { %2291 = vmatprep.subr.bf16.mxu1 %v3737_v20  ;;  %2332 = vmatprep.subr.bf16.mxu0 %v3740_v21  ;;  %v2233_v16 = vld [vmem:[#allocation5 + $0x27] ss:$8 sm:$0xf] }
 0x762   :  { %2292 = vmatpush1.bf16.msra.mxu1 %v3042_v36  ;;  %2333 = vmatpush1.bf16.msra.mxu0 %v3043_v39  ;;  %v2392_v36 = vld [vmem:[%s3909_s6 + $0x18] sm:$0xff] }
 0x763   :  { %2293 = vmatprep.subr.bf16.mxu1 %v3044_v53  ;;  %2334 = vmatprep.subr.bf16.mxu0 %v3045_v0  ;;  %v2759_v39 = vpack.c.bf16 %v2392_v36, %v2391_v30  ;;  %v2393_v53 = vld [vmem:[%s3909_s6 + $0x20] sm:$0xff]  ;;  %v2394_v0 = vld [vmem:[%s3909_s6 + $0x28] sm:$0xff] }
 0x766   :  { %2294 = vmatpush1.bf16.msra.mxu1 %v3046_v60  ;;  %2335 = vmatpush1.bf16.msra.mxu0 %v3047_v57  ;;  %v2762_v60 = vpack.c.bf16 %v2394_v0, %v2393_v53  ;;  %v2395_v57 = vld [vmem:[%s3909_s6 + $0x30] sm:$0xff]  ;;  %v2630_v53 = vld [vmem:[%s3910_s7] ss:$0 sm:$0xff]  ;;  %s3118_s7 = scalar_lea.vmem %s2502_s26, 32 }
 0x767   :  { %2295 = vmatprep.subr.bf16.mxu1 %v3048_v34  ;;  %2336 = vmatprep.subr.bf16.mxu0 %v3049_v4  ;;  %v2396_v34 = vld [vmem:[%s3909_s6 + $0x38] sm:$0xff]  ;;  %p3119_p10 = scmp.ne.s32.totalorder %s2502_s26, %s3118_s7  ;;  %p3124_p12 = scmp.lt.s32.totalorder %s3118_s7, %s3118_s7 }
 0x768   :  { %v2765_v4 = vpack.c.bf16 %v2396_v34, %v2395_v57 }
 0x769   :  { %p3125_p13 = por %p3124_p12, %p3123_p11 }
 0x76a   :  { %2296 = vmatpush1.bf16.msra.mxu1 %v3050_v5  ;;  %2337 = vmatpush1.bf16.msra.mxu0 %v3051_v6  ;;  %v2397_v5 = vld [vmem:[%s3909_s6 + $0x40] sm:$0xff]  ;;  %v2398_v6 = vld [vmem:[%s3909_s6 + $0x48] sm:$0xff] }
 0x76b   :  { %2755 = vmatprep.subr.bf16.mxu1 %v3156_v28  ;;  %v2768_v7 = vpack.c.bf16 %v2398_v6, %v2397_v5  ;;  %p3126_p0 = pnand %p3125_p13, %p3119_p10 }
 0x820   :  { %v2162_v18 = vpop.f32.mrb[32].mxu1  ;;  %v2203_v20 = vpop.f32.mrb[36].mxu0 }
 0x821   :  { %v2210_v21 = vadd.f32 %v2162_v18, %v2123_v17  ;;  %v2212_v31 = vadd.f32 %v2203_v20, %v2125_v19  ;;  %v2164_v2 = vpop.f32.mrb[33].mxu1  ;;  %v2205_v63 = vpop.f32.mrb[37].mxu0  ;;  %v2231_v17 = vld [vmem:[#allocation5 + $0x7] ss:$8 sm:$0xf]  ;;  %v2259_v18 = vrot.slane %v2233_v16, %v3423_v41  ;;  %v2267_v19 = vrot.slane %v2233_v16, %v3425_v42 }
 0x822   :  { %v2211_v62 = vadd.f32 %v2164_v2, %v2124_v1  ;;  %v2213_v46 = vadd.f32 %v2205_v63, %v2126_v32  ;;  %v2166_v61 = vpop.f32.mrb[34].mxu1  ;;  %v2207_v3 = vpop.f32.mrb[38].mxu0  ;;  %v2263_v20 = vrot.slane %v2233_v16, %v3430_v44  ;;  %v2246_v1 = vrot.slane %v2231_v17, %v3425_v42 }
 0x823   :  { %2996 = vtanh.f32 %v2210_v21  ;;  %v2167_v40 = vpop.f32.mrb[35].mxu1  ;;  %v2208_v43 = vpop.f32.mrb[39].mxu0  ;;  %v2271_v21 = vrot.slane %v2233_v16, %v3432_v45  ;;  %v2242_v2 = vrot.slane %v2231_v17, %v3430_v44  ;;  %v2250_v32 = vrot.slane %v2231_v17, %v3432_v45 }
 0x824   :  { %2998 = vtanh.f32 %v2211_v62 }
 0x825   :  { %3000 = vtanh.f32 %v2212_v31  ;;  %v2238_v31 = vrot.slane %v2231_v17, %v3423_v41  ;;  %v2277_v43 = vsel %vm1012_vm0, %v2242_v2, %v2263_v20 }
 0x826   :  { %3002 = vtanh.f32 %v2213_v46  ;;  %v2278_v46 = vsel %vm1012_vm0, %v2246_v1, %v2267_v19 }
 0x827   :  { %v2276_v63 = vsel %vm1012_vm0, %v2238_v31, %v2259_v18 }
 0x82d   :  { %v2997_v47 = vpop.eup %2996 }
 0x82e   :  { %v2218_v38 = vmul.f32 0.5, %v2997_v47  ;;  %v2999_v49 = vpop.eup %2998 }
 0x82f   :  { %v2220_v50 = vmul.f32 0.5, %v2999_v49  ;;  %v3001_v52 = vpop.eup %3000 }
 0x830   :  { %v2219_v48 = vadd.f32 0.5, %v2218_v38  ;;  %v3003_v33 = vpop.eup %3002  ;;  %v2279_v38 = vsel %vm1012_vm0, %v2250_v32, %v2271_v21 }
 0x831   :  { %v2221_v54 = vadd.f32 0.5, %v2220_v50  ;;  %v2222_v58 = vmul.f32 0.5, %v3003_v33 }
 0x832   :  { %v2225_v35 = vmul.f32 %v3001_v52, %v2219_v48 }
 0x833   :  { %v2224_v51 = vmul.f32 %v2221_v54, %v3768_v23  ;;  %v2223_v59 = vadd.f32 0.5, %v2222_v58  ;;  %v2389_v23 = vld [vmem:[%s3909_s6] sm:$0xff] }
 0x834   :  { %v2756_v27 = vpack.c.bf16 %v2390_v26, %v2389_v23 }
 0x835   :  { %v3811_v55 = vadd.f32 %v2225_v35, %v2224_v51 }
 0x837   :  { %3004 = vtanh.f32 %v3811_v55 }
 0x841   :  { %v3005_v56 = vpop.eup %3004 }
 0x842   :  { %v3814_v22 = vmul.f32 %v3005_v56, %v2223_v59 }
 0x844   :  { %v2229_v24 = vmax.f32 %v3774_v29, %v3814_v22  ;;  %v2280_v25 = vpack.c.bf16 %v3814_v22, %v3814_v22 }
 0x846   :  { %2314 = vmatmul.mubr.bf16.vlgmr.msra.gmra.mrb[36].mxu1 %v2280_v25  ;;  %2355 = vmatmul.mubr.bf16.vlgmr.msra.gmra.mrb[40].mxu0 %v2280_v25 }
 0x847   :  { %2757 = vmatpush3.bf16.msra.mxu1 %v2756_v27  ;;  %2752 = vmatprep.mubr.msk.f32.mxu1 %vm3157_vm1, %v3154_v37  ;;  %v2404_v37 = vld [vmem:[%s3909_s6 + $0x78] sm:$0xff] }
 0x848   :  { %2758 = vmatprep.subr.bf16.mxu1 %v3156_v28  ;;  %v2777_v15 = vpack.c.bf16 %v2404_v37, %v2403_v14 }
 0x84b   :  { %2760 = vmatpush3.bf16.msra.mxu1 %v2759_v39 }
 0x84c   :  { %2761 = vmatprep.subr.bf16.mxu1 %v3156_v28 }
 0x84f   :  { %2763 = vmatpush3.bf16.msra.mxu1 %v2762_v60 }
 0x850   :  { %2764 = vmatprep.subr.bf16.mxu1 %v3156_v28 }
 0x853   :  { %2766 = vmatpush3.bf16.msra.mxu1 %v2765_v4 }
 0x854   :  { %2767 = vmatprep.subr.bf16.mxu1 %v3156_v28 }
 0x857   :  { %2769 = vmatpush3.bf16.msra.mxu1 %v2768_v7 }
 0x858   :  { %2770 = vmatprep.subr.bf16.mxu1 %v3156_v28 }
 0x85b   :  { %2772 = vmatpush3.bf16.msra.mxu1 %v2771_v10 }
 0x85c   :  { %2773 = vmatprep.subr.bf16.mxu1 %v3156_v28 }
 0x85f   :  { %2775 = vmatpush3.bf16.msra.mxu1 %v2774_v13 }
 0x860   :  { %2776 = vmatprep.subr.bf16.mxu1 %v3156_v28 }
 0x863   :  { %2778 = vmatpush3.bf16.msra.mxu1 %v2777_v15 }
 0x919   :  { %v2315_v62 = vpop.f32.mrb[36].mxu1  ;;  %v2356_v61 = vpop.f32.mrb[40].mxu0 }
 0x91a   :  { %v2363_v3 = vadd.f32 %v2315_v62, %v2276_v63  ;;  %v2365_v40 = vadd.f32 %v2356_v61, %v2278_v46  ;;  %v2317_v47 = vpop.f32.mrb[37].mxu1  ;;  %v2358_v41 = vpop.f32.mrb[41].mxu0 }
 0x91b   :  { %v2364_v49 = vadd.f32 %v2317_v47, %v2277_v43  ;;  %v2366_v42 = vadd.f32 %v2358_v41, %v2279_v38  ;;  %v2319_v48 = vpop.f32.mrb[38].mxu1  ;;  %v2360_v44 = vpop.f32.mrb[42].mxu0 }
 0x91c   :  { %3006 = vtanh.f32 %v2363_v3  ;;  %v2320_v45 = vpop.f32.mrb[39].mxu1  ;;  %v2361_v50 = vpop.f32.mrb[43].mxu0 }
 0x91d   :  { %3008 = vtanh.f32 %v2364_v49 }
 0x91e   :  { %3010 = vtanh.f32 %v2365_v40 }
 0x91f   :  { %3012 = vtanh.f32 %v2366_v42 }
 0x926   :  { %v3007_v52 = vpop.eup %3006 }
 0x927   :  { %v2371_v54 = vmul.f32 0.5, %v3007_v52  ;;  %v3009_v35 = vpop.eup %3008 }
 0x928   :  { %v2373_v33 = vmul.f32 0.5, %v3009_v35  ;;  %v3011_v58 = vpop.eup %3010 }
 0x929   :  { %v2372_v51 = vadd.f32 0.5, %v2371_v54  ;;  %v3013_v26 = vpop.eup %3012 }
 0x92a   :  { %v2374_v59 = vadd.f32 0.5, %v2373_v33  ;;  %v2375_v27 = vmul.f32 0.5, %v3013_v26 }
 0x92b   :  { %v2378_v56 = vmul.f32 %v3011_v58, %v2372_v51 }
 0x92c   :  { %v2377_v25 = vmul.f32 %v2374_v59, %v3811_v55  ;;  %v2376_v28 = vadd.f32 0.5, %v2375_v27 }
 0x92e   :  { %v2379_v23 = vadd.f32 %v2378_v56, %v2377_v25 }
 0x930   :  { %3014 = vtanh.f32 %v2379_v23  ;;  %2384 = vst [vmem:[#allocation3] sm:$0x3] %v2379_v23 }
 0x93a   :  { %v3015_v30 = vpop.eup %3014 }
 0x93b   :  { %v2381_v36 = vmul.f32 %v3015_v30, %v2376_v28 }
 0x93d   :  { %2383 = vst [vmem:[#allocation2] sm:$0x3] %v2381_v36  ;;  %v2382_v39 = vmax.f32 %v2229_v24, %v2381_v36 }
 0x93f   :  { %2385 = vst [vmem:[#allocation4] sm:$0x3] %v2382_v39  ;;  %2753 = vmatmul.mubr.f32.vlgmr.msra.gmra.mrb[40].mxu1 %v2382_v39 }
 0xa12   :  { %v2478_v55 = vpop.f32.mrb[40].mxu1 }
 0xa13   :  { %v2479_v0 = vadd.f32 %v2630_v53, %v2478_v55  ;;  %v2754_v60 = vpop.f32.mrb[41].mxu1 }
 0xa15   :  { %v2483_v57 = vsel %vm2482_vm2, %v2479_v0, -inf }
 0xa16   :  { %2484 = vmax.xlane.f32.xlu0 %v2483_v57 }
 0xaa3   :  { %v2485_v34 = vpop.xlane.xlu0 %2484 }
 0xaa4   :  { %v2486_v4 = vsub.f32 %v2479_v0, %v2485_v34 }
 0xaa6   :  { %v2487_v5 = vmul.f32 1.442695, %v2486_v4 }
 0xaa8   :  { %3016 = vpow2.f32 %v2487_v5 }
 0xab2   :  { %v3017_v6 = vpop.eup %3016 }
 0xab3   :  { %v2489_v29 = vsel %vm2482_vm2, %v3017_v6, 0.0 }
 0xab4   :  { %2490 = vadd.xlane.f32.xlu0 %v2489_v29 }
 0xb41   :  { %v2491_v22 = vpop.xlane.xlu0 %2490 }
 0xb42   :  { %3018 = vrcp.f32 %v2491_v22 }
 0xb4c   :  { %v3019_v24 = vpop.eup %3018 }
 0xb4d   :  { %v2493_v7 = vmul.f32 %v3019_v24, %v3017_v6 }
 0xb4f   :  { %2494 = vst.msk [vmem:[#allocation12] sm:$0x3] %vm2482_vm2, %v2493_v7 }
 0xb50   :  { %3129 = shalt.err (!%p3126_p0)
}
 0xb51   :  { %s3130_s3 = scalar_lea.hbm %s3911_s8, 32 }
 0xb52   :  { %p3131_p1 = scmp.ne.s32.totalorder %s3911_s8, %s3130_s3  ;;  %p3134_p2 = scmp.lt.u32.totalorder %s3130_s3, %s3911_s8 }
 0xb54   :  { %p3136_p3 = pnand %p3134_p2, %p3131_p1 }
 0xb56   :  { %3139 = shalt.err (!%p3136_p3)
}
 0xb57   :  { %2504 = dma.vmem_to_hbm [thread:$0]  %s2502_s26, 32, %s3911_s8, [#allocation8]  }
 0xb58   :  { %3144 = dma.done.wait [#allocation8], 32  }
 0xb59   :  { %3145 = vsyncadd [#allocation8], 4294967264 }
 0xb5a   :  { %2508 = vsyncpa [#allocation7], 1 }
 0xb5b   :  { %2509 = vsyncpa [#allocation10], 1 }
 0xb5c   :  { %2510 = vsyncpa [#allocation8], 1 }

</bundles_post_ra>
